<compile_context>
chip_gen: v7x
topology: tpu7x:2x2x1
jax: 0.10.0
libtpu: 0.0.40
codegen_flags: <defaults>
</compile_context>

<pallas_src>
import jax
import jax.numpy as jnp
from jax import lax
from jax.experimental import pallas as pl
from jax.experimental.pallas import tpu as pltpu

NUM_CLASSES = 10
LANE_PAD = 128  # lane-dense output width (full, unmasked vst)


def _round_up(x, m):
    return ((x + m - 1) // m) * m


def head_kernel(x_ref, w_ref, b_ref, o_ref):
    """Fused token mean-pool + linear head for one batch tile.

    x_ref : (TB, N, C)   token features (f32 or bf16, VMEM)
    w_ref : (128, C)     bf16 digit1 weight, rows 10..127 zero, pre-scaled by 1/N
    b_ref : (1, 128)     f32 digit1 bias, lanes 10..127 zero
    o_ref : (TB, 128)    lane-dense f32 logits block
    """
    # Token-sum with f32 accumulation; no full-block f32 temp is materialized.
    summed = jnp.sum(x_ref[...], axis=1, dtype=jnp.float32)          # (TB, C)
    # trans-B matmul on the bf16 MXU path: (TB, C) . (128, C)^T -> (TB, 128).
    logits = lax.dot_general(
        summed.astype(w_ref.dtype), w_ref[...],
        dimension_numbers=(((1,), (1,)), ((), ())),
        preferred_element_type=jnp.float32)
    o_ref[...] = logits + b_ref[...]                                 # f32 out


def model1_head(features, w_digit1, b_digit1, *, tb=None):
    """features: (B, N, 768) f32/bf16; w_digit1: (10, 768); b_digit1: (10,)."""
    B, N, C = features.shape

    # Pad the batch only below the 8-sublane minimum; larger B uses a ragged
    # cdiv grid (no extra full HBM pass over the feature tensor).
    if B < 8:
        features = jnp.pad(features, ((0, 8 - B), (0, 0), (0, 0)))
    Bk = features.shape[0]

    # Batch tile: multiple of 8 sublanes; >= 2 grid steps when B allows it so
    # "parallel" shards across v7x's two TensorCores; capped at 128 so the
    # double-buffered f32 feature block stays inside v7x's 64 MiB VMEM
    # (bf16 features halve that footprint again).
    if tb is None:
        tb = min(128, max(8, _round_up(pl.cdiv(Bk, 2), 8)))
    tb = min(tb, Bk)
    if tb < Bk:
        tb = _round_up(tb, 8)
        if tb >= Bk:
            tb = Bk                     # full-extent block is always legal
    grid = (pl.cdiv(Bk, tb),)

    # Lane-pad weight/bias to 128 output lanes; fold the mean's 1/N scale into
    # the weight once (true token count N), and stream the weight in bf16.
    inv_n = 1.0 / float(N)
    w_pad = jnp.pad(w_digit1.astype(jnp.float32) * inv_n,
                    ((0, LANE_PAD - NUM_CLASSES), (0, 0))
                    ).astype(jnp.bfloat16)                       # (128, C) bf16
    b_pad = jnp.pad(b_digit1.astype(jnp.float32),
                    (0, LANE_PAD - NUM_CLASSES)).reshape(1, LANE_PAD)

    feat_bytes = features.dtype.itemsize
    w_bytes = w_pad.dtype.itemsize

    # Scoped-VMEM budget derived from the actual double-buffered footprint.
    vmem_bytes = (2 * tb * N * C * feat_bytes          # feature blocks (x2)
                  + 2 * LANE_PAD * C * w_bytes         # bf16 weight
                  + 2 * LANE_PAD * 4                   # bias
                  + 2 * tb * LANE_PAD * 4)             # output blocks (x2)
    vmem_limit = int(min(100 * 1024 * 1024,
                         vmem_bytes + 8 * 1024 * 1024))  # + headroom

    cost = pl.CostEstimate(
        flops=2 * Bk * C * LANE_PAD + Bk * N * C,
        transcendentals=0,
        bytes_accessed=(Bk * N * C * feat_bytes         # features
                        + LANE_PAD * C * w_bytes        # padded bf16 weight
                        + LANE_PAD * 4                  # padded f32 bias
                        + Bk * LANE_PAD * 4),           # padded f32 output
    )

    out_padded = pl.pallas_call(
        head_kernel,
        out_shape=jax.ShapeDtypeStruct((Bk, LANE_PAD), jnp.float32),
        grid=grid,
        in_specs=[
            pl.BlockSpec((tb, N, C), lambda i: (i, 0, 0)),
            pl.BlockSpec((LANE_PAD, C), lambda i: (0, 0)),
            pl.BlockSpec((1, LANE_PAD), lambda i: (0, 0)),
        ],
        out_specs=pl.BlockSpec((tb, LANE_PAD), lambda i: (i, 0)),
        compiler_params=pltpu.CompilerParams(
            dimension_semantics=("parallel",),
            vmem_limit_bytes=vmem_limit,
        ),
        cost_estimate=cost,
    )(features, w_pad, b_pad)

    return out_padded[:B, :NUM_CLASSES]


def model1_head_ref(features, w_digit1, b_digit1):
    pooled = jnp.mean(features.astype(jnp.float32), axis=1)
    return pooled @ w_digit1.astype(jnp.float32).T + b_digit1.astype(jnp.float32)


if __name__ == "__main__":
    key = jax.random.PRNGKey(0)
    k_feat, k_w, k_b = jax.random.split(key, 3)

    # Module-consistent small shapes:
    #   swin_tiny forward_features -> (B, 49, 768) tokens; head is Linear(768, 10).
    B, N, C = 2, 49, 768
    features = jax.random.normal(k_feat, (B, N, C), dtype=jnp.float32)

    # Deterministic synthetic parameters for nn.Linear(768, 10).
    w_digit1 = jax.random.normal(k_w, (NUM_CLASSES, C), dtype=jnp.float32) * 0.02
    b_digit1 = jax.random.normal(k_b, (NUM_CLASSES,), dtype=jnp.float32) * 0.01

    out = model1_head(features, w_digit1, b_digit1)
    out = jax.block_until_ready(out)

    ref = model1_head_ref(features, w_digit1, b_digit1)
    assert out.shape == (B, NUM_CLASSES)
    # bf16 weight / bf16-MXU matmul path with f32 accumulation:
    # bf16-appropriate tolerances.
    assert jnp.allclose(out, ref, atol=1e-2, rtol=1e-2)

    print("KERNEL_OK")
</pallas_src>

<mosaic_0001>
module attributes {stable_mosaic.version = 11 : i64} {
  func.func @head_kernel(%arg0: i32, %arg1: memref<8x49x768xf32, #tpu.memory_space<vmem>>, %arg2: memref<128x768xbf16, #tpu.memory_space<vmem>>, %arg3: memref<1x128xf32, #tpu.memory_space<vmem>>, %arg4: memref<8x128xf32, #tpu.memory_space<vmem>>) attributes {dimension_semantics = [#tpu.dimension_semantics<parallel>], iteration_bounds = array<i64: 1>, scalar_prefetch = 0 : i64, scratch_operands = 0 : i64, tpu.core_type = #tpu.core_type<tc>, window_params = [{transform_indices = @transform_0, window_bounds = array<i64: 8, 49, 768>}, {pipeline_mode = #tpu.pipeline_mode<synchronous>, transform_indices = @transform_1, window_bounds = array<i64: 128, 768>}, {pipeline_mode = #tpu.pipeline_mode<synchronous>, transform_indices = @transform_2, window_bounds = array<i64: 1, 128>}, {transform_indices = @transform_3, window_bounds = array<i64: 8, 128>}]} {
    %c0 = arith.constant 0 : index
    %c0_0 = arith.constant 0 : index
    %c0_1 = arith.constant 0 : index
    %0 = vector.load %arg1[%c0, %c0_0, %c0_1] : memref<8x49x768xf32, #tpu.memory_space<vmem>>, vector<8x49x768xf32>
    %cst = arith.constant dense<0.000000e+00> : vector<8x768xf32>
    %1 = vector.multi_reduction <add>, %0, %cst [1] : vector<8x49x768xf32> to vector<8x768xf32>
    %2 = arith.truncf %1 : vector<8x768xf32> to vector<8x768xbf16>
    %c0_2 = arith.constant 0 : index
    %c0_3 = arith.constant 0 : index
    %3 = vector.load %arg2[%c0_2, %c0_3] : memref<128x768xbf16, #tpu.memory_space<vmem>>, vector<128x768xbf16>
    %cst_4 = arith.constant dense<0.000000e+00> : vector<8x128xf32>
    %4 = tpu.matmul %2, %3, %cst_4 {dimension_numbers = #tpu.dot_dimension_numbers<[1], [1], [0], [0], [0, 0, 1, 0], [], []>} : vector<8x768xbf16>, vector<128x768xbf16>, vector<8x128xf32> -> vector<8x128xf32>
    %c0_5 = arith.constant 0 : index
    %c0_6 = arith.constant 0 : index
    %5 = vector.load %arg3[%c0_5, %c0_6] : memref<1x128xf32, #tpu.memory_space<vmem>>, vector<1x128xf32>
    %6 = vector.broadcast %5 : vector<1x128xf32> to vector<8x128xf32>
    %7 = arith.addf %4, %6 : vector<8x128xf32>
    %c0_7 = arith.constant 0 : index
    %c0_8 = arith.constant 0 : index
    %8 = vector.load %arg4[%c0_7, %c0_8] : memref<8x128xf32, #tpu.memory_space<vmem>>, vector<8x128xf32>
    tpu.vector_store %arg4[%c0_7, %c0_8], %7 {strides = array<i32>} : memref<8x128xf32, #tpu.memory_space<vmem>>, vector<8x128xf32>,
    return
  }
  func.func @transform_0(%arg0: i32) -> (i32, i32, i32) {
    %c0_i32 = arith.constant 0 : i32
    %c0_i32_0 = arith.constant 0 : i32
    %c0_i32_1 = arith.constant 0 : i32
    return %arg0, %c0_i32, %c0_i32_0 : i32, i32, i32
  }
  func.func @transform_1(%arg0: i32) -> (i32, i32) {
    %c0_i32 = arith.constant 0 : i32
    %c0_i32_0 = arith.constant 0 : i32
    %c0_i32_1 = arith.constant 0 : i32
    return %c0_i32, %c0_i32_0 : i32, i32
  }
  func.func @transform_2(%arg0: i32) -> (i32, i32) {
    %c0_i32 = arith.constant 0 : i32
    %c0_i32_0 = arith.constant 0 : i32
    %c0_i32_1 = arith.constant 0 : i32
    return %c0_i32, %c0_i32_0 : i32, i32
  }
  func.func @transform_3(%arg0: i32) -> (i32, i32) {
    %c0_i32 = arith.constant 0 : i32
    %c0_i32_0 = arith.constant 0 : i32
    return %arg0, %c0_i32 : i32, i32
  }
}

</mosaic_0001>

<bundles_post_ra>
// kernel: tpu_custom_call.1
= control target key start
LH: loop header
LB: loop body
LE: loop exit
PB: predicated region body
PF: predicated region fallthrough
CT: control target
= control target key end

     0   :  { %vm357_vm0 = vcmask 1040384   ;;  %vm1176_vm1 = vcmask 1041409   ;;  %vm1178_vm2 = vcmask 1042434   ;;  %vm1180_vm3 = vcmask 1043459   ;;  %s3072_s0 = inlined_call_operand.vmem [shape: f32[8,49,768], index: 0, kind: input, shape index: {}]   ;;  %s3073_s1 = inlined_call_operand.vmem [shape: bf16[128,768], index: 1, kind: input, shape index: {}]   ;;  %s3074_s2 = inlined_call_operand.vmem [shape: f32[1,128], index: 2, kind: input, shape index: {}]   ;;  %s3075_s3 = inlined_call_operand.hbm [shape: f32[8,128], index: 3, kind: output, shape index: {}]  }
   0x1   :  { %v1668_v0 = vld [vmem:[%s3073_s1 + $0xc] ss:$24 sps:$4 sm:$0xff]   ;;  %v1670_v1 = vld [vmem:[%s3073_s1 + $0x8] ss:$24 sps:$4 sm:$0xff]   ;;  %v1671_v2 = vld [vmem:[%s3073_s1 + $0x3c] ss:$24 sps:$4 sm:$0xff]  }
   0x2   :  { %1517 = vmatprep.subr.bf16.mxu0 %v1668_v0  ;;  %v1673_v3 = vld [vmem:[%s3073_s1 + $0x38] ss:$24 sps:$4 sm:$0xff]   ;;  %v1674_v4 = vld [vmem:[%s3073_s1 + $0x6c] ss:$24 sps:$4 sm:$0xff]   ;;  %v1676_v10 = vld [vmem:[%s3073_s1 + $0x68] ss:$24 sps:$4 sm:$0xff]  }
   0x3   :  { %1518 = vmatpush1.bf16.xpose.msra.mxu0 %v1670_v1  ;;  %v1692_v5 = vld [vmem:[%s3073_s1 + $0x4] ss:$24 sps:$4 sm:$0xff]   ;;  %v1694_v6 = vld [vmem:[%s3073_s1] ss:$24 sps:$4 sm:$0xff]   ;;  %v25_v8 = vld [vmem:[%s3072_s0 + $0x48] sm:$0xff]  ;;  %vm1182_vm4 = vcmask 1044484  }
   0x4   :  { %1519 = vmatprep.subr.bf16.mxu0 %v1671_v2  ;;  %v19_v7 = vld [vmem:[%s3072_s0 + $0x18] sm:$0xff]  ;;  %1477 = vmatprep.subr.bf16.mxu1 %v1692_v5  ;;  %v37_v12 = vld [vmem:[%s3072_s0 + $0xa8] sm:$0xff]  ;;  %vm1184_vm5 = vcmask 1045509   ;;  %vm1186_vm6 = vcmask 1046534   ;;  %vm1188_vm7 = vcmask 1047559  }
   0x5   :  { %v31_v9 = vld [vmem:[%s3072_s0 + $0x78] sm:$0xff]  ;;  %v392_v11 = vadd.f32 %v25_v8, %v19_v7  ;;  %1478 = vmatpush1.bf16.xpose.msra.mxu1 %v1694_v6  ;;  %v61_v13 = vld [vmem:[%s3072_s0 + $0x168] sm:$0xff] }
   0x6   :  { %v67_v14 = vld [vmem:[%s3072_s0 + $0x198] sm:$0xff]  ;;  %v73_v17 = vld [vmem:[%s3072_s0 + $0x1c8] sm:$0xff] }
   0x7   :  { %v1677_v15 = vld [vmem:[%s3073_s1 + $0x9c] ss:$24 sps:$4 sm:$0xff]   ;;  %v393_v18 = vadd.f32 %v392_v11, %v31_v9  ;;  %v470_v19 = vadd.f32 %v67_v14, %v61_v13  ;;  %v49_v20 = vld [vmem:[%s3072_s0 + $0x108] sm:$0xff]  ;;  %v55_v23 = vld [vmem:[%s3072_s0 + $0x138] sm:$0x1] }
   0x8   :  { %v43_v16 = vld [vmem:[%s3072_s0 + $0xd8] sm:$0xff]  ;;  %v109_v24 = vld [vmem:[%s3072_s0 + $0x2e8] sm:$0xff]  ;;  %v397_v40 = vsel %vm357_vm0, %v55_v23, 0.0 }
   0x9   :  { %v79_v21 = vld [vmem:[%s3072_s0 + $0x1f8] sm:$0xff]  ;;  %v394_v26 = vadd.f32 %v393_v18, %v37_v12  ;;  %v471_v27 = vadd.f32 %v470_v19, %v73_v17  ;;  %v85_v28 = vld [vmem:[%s3072_s0 + $0x228] sm:$0xff] }
   0xa   :  { %v103_v22 = vld [vmem:[%s3072_s0 + $0x2b8] sm:$0xff]  ;;  %v97_v29 = vld [vmem:[%s3072_s0 + $0x288] sm:$0x1]  ;;  %v1680_v50 = vld [vmem:[%s3073_s1 + $0xcc] ss:$24 sps:$4 sm:$0xff]  }
   0xb   :  { %1520 = vmatpush1.bf16.xpose.msra.mxu0 %v1673_v3  ;;  %v115_v25 = vld [vmem:[%s3072_s0 + $0x318] sm:$0xff]  ;;  %v121_v30 = vld [vmem:[%s3072_s0 + $0x348] sm:$0xff]  ;;  %v548_v31 = vadd.f32 %v109_v24, %v103_v22  ;;  %v395_v35 = vadd.f32 %v394_v26, %v43_v16  ;;  %v472_v36 = vadd.f32 %v471_v27, %v79_v21  ;;  %v475_v54 = vsel %vm357_vm0, %v97_v29, 0.0 }
   0xc   :  { %1521 = vmatprep.subr.bf16.mxu0 %v1674_v4  ;;  %v145_v32 = vld [vmem:[%s3072_s0 + $0x408] sm:$0xff]  ;;  %v151_v33 = vld [vmem:[%s3072_s0 + $0x438] sm:$0xff] }
   0xd   :  { %v157_v34 = vld [vmem:[%s3072_s0 + $0x468] sm:$0xff]  ;;  %v91_v37 = vld [vmem:[%s3072_s0 + $0x258] sm:$0xff]  ;;  %v549_v41 = vadd.f32 %v548_v31, %v115_v25  ;;  %v626_v42 = vadd.f32 %v151_v33, %v145_v32  ;;  %v396_v48 = vadd.f32 %v395_v35, %v49_v20  ;;  %v473_v49 = vadd.f32 %v472_v36, %v85_v28 }
   0xe   :  { %v127_v38 = vld [vmem:[%s3072_s0 + $0x378] sm:$0xff]  ;;  %v133_v44 = vld [vmem:[%s3072_s0 + $0x3a8] sm:$0xff] }
   0xf   :  { %v139_v39 = vld [vmem:[%s3072_s0 + $0x3d8] sm:$0x1]  ;;  %v193_v47 = vld [vmem:[%s3072_s0 + $0x588] sm:$0xff]  ;;  %v550_v55 = vadd.f32 %v549_v41, %v121_v30  ;;  %v627_v56 = vadd.f32 %v626_v42, %v157_v34  ;;  %v398_v61 = vadd.f32 %v397_v40, %v396_v48  ;;  %v474_v62 = vadd.f32 %v473_v49, %v91_v37 }
  0x10   :  { %v1679_v43 = vld [vmem:[%s3073_s1 + $0x98] ss:$24 sps:$4 sm:$0xff]   ;;  %v169_v51 = vld [vmem:[%s3072_s0 + $0x4c8] sm:$0xff]  ;;  %v553_v3 = vsel %vm357_vm0, %v139_v39, 0.0 }
  0x11   :  { %v163_v45 = vld [vmem:[%s3072_s0 + $0x498] sm:$0xff]  ;;  %v181_v52 = vld [vmem:[%s3072_s0 + $0x528] sm:$0x1]  ;;  %v551_v2 = vadd.f32 %v550_v55, %v127_v38  ;;  %v399_v9 = vrot.slane %v398_v61, 4 }
  0x12   :  { %v187_v46 = vld [vmem:[%s3072_s0 + $0x558] sm:$0xff]  ;;  %v205_v58 = vld [vmem:[%s3072_s0 + $0x5e8] sm:$0xff]  ;;  %v628_v4 = vadd.f32 %v627_v56, %v163_v45  ;;  %v631_v11 = vsel %vm357_vm0, %v181_v52, 0.0 }
  0x13   :  { %1522 = vmatpush1.bf16.xpose.msra.mxu0 %v1676_v10  ;;  %v199_v53 = vld [vmem:[%s3072_s0 + $0x5b8] sm:$0xff]  ;;  %v704_v57 = vadd.f32 %v193_v47, %v187_v46  ;;  %v229_v60 = vld [vmem:[%s3072_s0 + $0x6a8] sm:$0xff]  ;;  %v476_v10 = vadd.f32 %v475_v54, %v474_v62  ;;  %v552_v16 = vadd.f32 %v551_v2, %v133_v44  ;;  %v400_v21 = vadd.f32 %v399_v9, %v398_v61 }
  0x14   :  { %1523 = vmatprep.subr.bf16.mxu0 %v1677_v15  ;;  %v223_v59 = vld [vmem:[%s3072_s0 + $0x678] sm:$0x1]  ;;  %v241_v1 = vld [vmem:[%s3072_s0 + $0x708] sm:$0xff]  ;;  %v629_v17 = vadd.f32 %v628_v4, %v169_v51 }
  0x15   :  { %v175_v63 = vld [vmem:[%s3072_s0 + $0x4f8] sm:$0xff]  ;;  %v705_v5 = vadd.f32 %v704_v57, %v199_v53  ;;  %v265_v8 = vld [vmem:[%s3072_s0 + $0x7c8] sm:$0x1]  ;;  %v709_v19 = vsel %vm357_vm0, %v223_v59, 0.0  ;;  %v477_v22 = vrot.slane %v476_v10, 4  ;;  %v554_v28 = vadd.f32 %v553_v3, %v552_v16 }
  0x16   :  { %v235_v0 = vld [vmem:[%s3072_s0 + $0x6d8] sm:$0xff]  ;;  %v277_v14 = vld [vmem:[%s3072_s0 + $0x828] sm:$0xff]  ;;  %v630_v29 = vadd.f32 %v629_v17, %v175_v63  ;;  %v787_v31 = vsel %vm357_vm0, %v265_v8, 0.0  ;;  %v401_v34 = vrot.slane %v400_v21, 2 }
  0x17   :  { %v211_v6 = vld [vmem:[%s3072_s0 + $0x618] sm:$0xff]  ;;  %v782_v12 = vadd.f32 %v235_v0, %v229_v60  ;;  %v706_v18 = vadd.f32 %v705_v5, %v205_v58  ;;  %v217_v20 = vld [vmem:[%s3072_s0 + $0x648] sm:$0xff]  ;;  %v478_v35 = vadd.f32 %v477_v22, %v476_v10  ;;  %v555_v40 = vrot.slane %v554_v28, 4 }
  0x18   :  { %v247_v7 = vld [vmem:[%s3072_s0 + $0x738] sm:$0xff]  ;;  %v253_v25 = vld [vmem:[%s3072_s0 + $0x768] sm:$0xff]  ;;  %v632_v41 = vadd.f32 %v631_v11, %v630_v29  ;;  %v402_v46 = vadd.f32 %v401_v34, %v400_v21 }
  0x19   :  { %v271_v13 = vld [vmem:[%s3072_s0 + $0x7f8] sm:$0xff]  ;;  %v783_v23 = vadd.f32 %v782_v12, %v241_v1  ;;  %v289_v26 = vld [vmem:[%s3072_s0 + $0x888] sm:$0xff]  ;;  %v707_v30 = vadd.f32 %v706_v18, %v211_v6  ;;  %v479_v47 = vrot.slane %v478_v35, 2  ;;  %v556_v52 = vadd.f32 %v555_v40, %v554_v28  ;;  %v30_v40 = vld [vmem:[%s3072_s0 + $0x70] sm:$0xff] }
  0x1a   :  { %v283_v15 = vld [vmem:[%s3072_s0 + $0x858] sm:$0xff]  ;;  %v860_v24 = vadd.f32 %v277_v14, %v271_v13  ;;  %v313_v32 = vld [vmem:[%s3072_s0 + $0x948] sm:$0xff]  ;;  %v633_v53 = vrot.slane %v632_v41, 4  ;;  %v403_v57 = vrot.slane %v402_v46, 1 }
  0x1b   :  { %1524 = vmatpush1.bf16.xpose.msra.mxu0 %v1679_v43  ;;  %v307_v27 = vld [vmem:[%s3072_s0 + $0x918] sm:$0x1]  ;;  %v784_v36 = vadd.f32 %v783_v23, %v247_v7  ;;  %v708_v42 = vadd.f32 %v707_v30, %v217_v20  ;;  %v1682_v44 = vld [vmem:[%s3073_s1 + $0xc8] ss:$24 sps:$4 sm:$0xff]   ;;  %v480_v58 = vadd.f32 %v479_v47, %v478_v35  ;;  %v557_v62 = vrot.slane %v556_v52, 2  ;;  %v18_v30 = vld [vmem:[%s3072_s0 + $0x10] sm:$0xff] }
  0x1c   :  { %1525 = vmatprep.subr.bf16.mxu0 %v1680_v50  ;;  %v319_v33 = vld [vmem:[%s3072_s0 + $0x978] sm:$0xff]  ;;  %v861_v37 = vadd.f32 %v860_v24, %v283_v15  ;;  %v865_v43 = vsel %vm357_vm0, %v307_v27, 0.0  ;;  %v325_v45 = vld [vmem:[%s3072_s0 + $0x9a8] sm:$0xff]  ;;  %v634_v63 = vadd.f32 %v633_v53, %v632_v41  ;;  %v404_v3 = vadd.f32 %v403_v57, %v402_v46  ;;  %v54_v41 = vld [vmem:[%s3072_s0 + $0x130] sm:$0x1] }
  0x1d   :  { %v259_v38 = vld [vmem:[%s3072_s0 + $0x798] sm:$0xff]  ;;  %v785_v48 = vadd.f32 %v784_v36, %v253_v25  ;;  %v301_v51 = vld [vmem:[%s3072_s0 + $0x8e8] sm:$0xff]  ;;  %v710_v54 = vadd.f32 %v709_v19, %v708_v42  ;;  %v938_v55 = vadd.f32 %v319_v33, %v313_v32  ;;  %v481_v4 = vrot.slane %v480_v58, 1  ;;  %v96_v57 = vld [vmem:[%s3072_s0 + $0x280] sm:$0x1] }
  0x1e   :  { %v295_v39 = vld [vmem:[%s3072_s0 + $0x8b8] sm:$0xff]  ;;  %v862_v49 = vadd.f32 %v861_v37, %v289_v26  ;;  %v349_v61 = vld [vmem:[%s3072_s0 + $0xa68] sm:$0x1]  ;;  %v558_v7 = vadd.f32 %v557_v62, %v556_v52  ;;  %v635_v8 = vrot.slane %v634_v63, 2  ;;  %v980_v23 = vpack.c.bf16 %v404_v3, %v404_v3  ;;  %v1686_v25 = vld [vmem:[%s3073_s1 + $0x12c] ss:$24 sps:$4 sm:$0xff]  }
  0x1f   :  { %v1683_v50 = vld [vmem:[%s3073_s1 + $0xfc] ss:$24 sps:$4 sm:$0xff]   ;;  %v786_v59 = vadd.f32 %v785_v48, %v259_v38  ;;  %v711_v0 = vrot.slane %v710_v54, 4  ;;  %v939_v1 = vadd.f32 %v938_v55, %v325_v45  ;;  %v337_v2 = vld [vmem:[%s3072_s0 + $0xa08] sm:$0xff]  ;;  %v482_v12 = vadd.f32 %v481_v4, %v480_v58  ;;  %v1685_v20 = vld [vmem:[%s3073_s1 + $0xf8] ss:$24 sps:$4 sm:$0xff]  }
  0x20   :  { %v331_v56 = vld [vmem:[%s3072_s0 + $0x9d8] sm:$0xff]  ;;  %v863_v60 = vadd.f32 %v862_v49, %v295_v39  ;;  %v943_v15 = vsel %vm357_vm0, %v349_v61, 0.0  ;;  %v559_v16 = vrot.slane %v558_v7, 1  ;;  %v636_v17 = vadd.f32 %v635_v8, %v634_v63  ;;  %v66_v52 = vld [vmem:[%s3072_s0 + $0x190] sm:$0xff]  ;;  %v1688_v53 = vld [vmem:[%s3073_s1 + $0x128] ss:$24 sps:$4 sm:$0xff]  }
  0x21   :  { %v788_v5 = vadd.f32 %v787_v31, %v786_v59  ;;  %v712_v9 = vadd.f32 %v711_v0, %v710_v54  ;;  %v940_v10 = vadd.f32 %v939_v1, %v331_v56  ;;  %v343_v11 = vld [vmem:[%s3072_s0 + $0xa38] sm:$0xff]  ;;  %v986_v24 = vpack.c.bf16 %v482_v12, %v482_v12  ;;  %v24_v31 = vld [vmem:[%s3072_s0 + $0x40] sm:$0xff]  ;;  %v42_v56 = vld [vmem:[%s3072_s0 + $0xd0] sm:$0xff] }
  0x22   :  { %v864_v6 = vadd.f32 %v863_v60, %v301_v51  ;;  %v560_v26 = vadd.f32 %v559_v16, %v558_v7  ;;  %v637_v27 = vrot.slane %v636_v17, 1  ;;  %v1131_v34 = vunpack.c.l.b16 %v980_v23  ;;  %v60_v51 = vld [vmem:[%s3072_s0 + $0x160] sm:$0xff]  ;;  %v1689_v60 = vld [vmem:[%s3073_s1 + $0x15c] ss:$24 sps:$4 sm:$0xff]   ;;  %v138_v8 = vld [vmem:[%s3072_s0 + $0x3d0] sm:$0x1] }
  0x23   :  { %1526 = vmatpush1.bf16.xpose.msra.mxu0 %v1682_v44  ;;  %v789_v13 = vrot.slane %v788_v5, 4  ;;  %v713_v18 = vrot.slane %v712_v9, 2  ;;  %v941_v19 = vadd.f32 %v940_v10, %v337_v2  ;;  %v1137_v35 = vunpack.c.l.b16 %v986_v24  ;;  %v48_v1 = vld [vmem:[%s3072_s0 + $0x100] sm:$0xff]  ;;  %v78_v3 = vld [vmem:[%s3072_s0 + $0x1f0] sm:$0xff] }
  0x24   :  { %1527 = vmatprep.subr.bf16.mxu0 %v1683_v50  ;;  %v866_v14 = vadd.f32 %v865_v43, %v864_v6  ;;  %v638_v36 = vadd.f32 %v637_v27, %v636_v17  ;;  %v992_v39 = vpack.c.bf16 %v560_v26, %v560_v26  ;;  %v379_v45 = vadd.f32 %v24_v31, %v18_v30  ;;  %v36_v50 = vld [vmem:[%s3072_s0 + $0xa0] sm:$0xff]  ;;  %v102_v6 = vld [vmem:[%s3072_s0 + $0x2b0] sm:$0xff] }
  0x25   :  { %v790_v21 = vadd.f32 %v789_v13, %v788_v5  ;;  %v714_v28 = vadd.f32 %v713_v18, %v712_v9  ;;  %v942_v29 = vadd.f32 %v941_v19, %v343_v11  ;;  %v1204_v44 = vsel %vm1176_vm1, %v1137_v35, %v1131_v34  ;;  %v72_v2 = vld [vmem:[%s3072_s0 + $0x1c0] sm:$0xff]  ;;  %v150_v17 = vld [vmem:[%s3072_s0 + $0x430] sm:$0xff] }
  0x26   :  { %v867_v22 = vrot.slane %v866_v14, 4  ;;  %v998_v48 = vpack.c.bf16 %v638_v36, %v638_v36  ;;  %v1143_v49 = vunpack.c.l.b16 %v992_v39  ;;  %v380_v58 = vadd.f32 %v379_v45, %v30_v40  ;;  %v108_v7 = vld [vmem:[%s3072_s0 + $0x2e0] sm:$0xff]  ;;  %v186_v24 = vld [vmem:[%s3072_s0 + $0x550] sm:$0xff] }
  0x27   :  { %v791_v32 = vrot.slane %v790_v21, 2  ;;  %v715_v37 = vrot.slane %v714_v28, 1  ;;  %v944_v38 = vadd.f32 %v943_v15, %v942_v29  ;;  %v2038_v59 = vsel %vm357_vm0, %v54_v41, 0.0  ;;  %v114_v15 = vld [vmem:[%s3072_s0 + $0x310] sm:$0xff]  ;;  %v144_v16 = vld [vmem:[%s3072_s0 + $0x400] sm:$0xff] }
  0x28   :  { %v868_v33 = vadd.f32 %v867_v22, %v866_v14  ;;  %v1149_v63 = vunpack.c.l.b16 %v998_v48  ;;  %v1205_v0 = vsel %vm1178_vm2, %v1143_v49, %v1204_v44  ;;  %v381_v9 = vadd.f32 %v380_v58, %v36_v50  ;;  %v84_v14 = vld [vmem:[%s3072_s0 + $0x220] sm:$0xff]  ;;  %v90_v29 = vld [vmem:[%s3072_s0 + $0x250] sm:$0xff] }
  0x29   :  { %v792_v42 = vadd.f32 %v791_v32, %v790_v21  ;;  %v716_v46 = vadd.f32 %v715_v37, %v714_v28  ;;  %v945_v47 = vrot.slane %v944_v38, 4  ;;  %v457_v10 = vadd.f32 %v66_v52, %v60_v51  ;;  %v120_v21 = vld [vmem:[%s3072_s0 + $0x340] sm:$0xff]  ;;  %v222_v31 = vld [vmem:[%s3072_s0 + $0x670] sm:$0x1]  ;;  %v1698_v41 = vld [vmem:[%s3073_s1 + $0x34] ss:$24 sps:$4 sm:$0xff]  }
  0x2a   :  { %v869_v43 = vrot.slane %v868_v33, 2  ;;  %v1206_v13 = vsel %vm1180_vm3, %v1149_v63, %v1205_v0  ;;  %v2076_v18 = vsel %vm357_vm0, %v96_v57, 0.0  ;;  %v156_v22 = vld [vmem:[%s3072_s0 + $0x460] sm:$0xff]  ;;  %v535_v32 = vadd.f32 %v108_v7, %v102_v6  ;;  %v126_v36 = vld [vmem:[%s3072_s0 + $0x370] sm:$0xff]  ;;  %1479 = vmatprep.subr.bf16.mxu1 %v1698_v41 }
  0x2b   :  { %1528 = vmatpush1.bf16.xpose.msra.mxu0 %v1685_v20  ;;  %v793_v54 = vrot.slane %v792_v42, 1  ;;  %v946_v61 = vadd.f32 %v945_v47, %v944_v38  ;;  %v1004_v62 = vpack.c.bf16 %v716_v46, %v716_v46  ;;  %v180_v23 = vld [vmem:[%s3072_s0 + $0x520] sm:$0x1]  ;;  %v458_v26 = vadd.f32 %v457_v10, %v72_v2  ;;  %v162_v37 = vld [vmem:[%s3072_s0 + $0x490] sm:$0xff]  ;;  %v1704_v0 = vld [vmem:[%s3073_s1 + $0x64] ss:$24 sps:$4 sm:$0xff]  }
  0x2c   :  { %1529 = vmatprep.subr.bf16.mxu0 %v1686_v25  ;;  %v870_v55 = vadd.f32 %v869_v43, %v868_v33  ;;  %v382_v25 = vadd.f32 %v381_v9, %v42_v56  ;;  %v192_v30 = vld [vmem:[%s3072_s0 + $0x580] sm:$0xff]  ;;  %v2101_v33 = vsel %vm357_vm0, %v138_v8, 0.0  ;;  %v198_v38 = vld [vmem:[%s3072_s0 + $0x5b0] sm:$0xff]  ;;  %v536_v45 = vadd.f32 %v535_v32, %v114_v15 }
  0x2d   :  { %v794_v4 = vadd.f32 %v793_v54, %v792_v42  ;;  %v947_v11 = vrot.slane %v946_v61, 2  ;;  %v1155_v12 = vunpack.c.l.b16 %v1004_v62  ;;  %v459_v40 = vadd.f32 %v458_v26, %v78_v3  ;;  %v1700_v42 = vld [vmem:[%s3073_s1 + $0x30] ss:$24 sps:$4 sm:$0xff]   ;;  %v228_v44 = vld [vmem:[%s3072_s0 + $0x6a0] sm:$0xff]  ;;  %v1697_v58 = vld [vmem:[%s3073_s1 + $0x14] ss:$24 sps:$4 sm:$0xff]  }
  0x2e   :  { %v871_v5 = vrot.slane %v870_v55, 1  ;;  %v383_v39 = vadd.f32 %v382_v25, %v48_v1  ;;  %v613_v46 = vadd.f32 %v150_v17, %v144_v16  ;;  %v2122_v47 = vsel %vm357_vm0, %v180_v23, 0.0  ;;  %v1691_v48 = vld [vmem:[%s3073_s1 + $0x158] ss:$24 sps:$4 sm:$0xff]   ;;  %v132_v51 = vld [vmem:[%s3072_s0 + $0x3a0] sm:$0xff]  ;;  %1480 = vmatpush1.bf16.xpose.msra.mxu1 %v1700_v42 }
  0x2f   :  { %v1010_v20 = vpack.c.bf16 %v794_v4, %v794_v4  ;;  %v948_v27 = vadd.f32 %v947_v11, %v946_v61  ;;  %v1207_v28 = vsel %vm1182_vm4, %v1155_v12, %v1206_v13  ;;  %v168_v52 = vld [vmem:[%s3072_s0 + $0x4c0] sm:$0xff]  ;;  %v234_v54 = vld [vmem:[%s3072_s0 + $0x6d0] sm:$0xff]  ;;  %v460_v56 = vadd.f32 %v459_v40, %v84_v14  ;;  %1481 = vmatprep.subr.bf16.mxu1 %v1704_v0 }
  0x30   :  { %v872_v19 = vadd.f32 %v871_v5, %v870_v55  ;;  %v385_v55 = vadd.f32 %v2038_v59, %v383_v39  ;;  %v537_v61 = vadd.f32 %v536_v45, %v120_v21  ;;  %v614_v62 = vadd.f32 %v613_v46, %v156_v22  ;;  %v174_v1 = vld [vmem:[%s3072_s0 + $0x4f0] sm:$0xff]  ;;  %v240_v3 = vld [vmem:[%s3072_s0 + $0x700] sm:$0xff] }
  0x31   :  { %v1161_v35 = vunpack.c.l.b16 %v1010_v20  ;;  %v949_v43 = vrot.slane %v948_v27, 1  ;;  %v691_v63 = vadd.f32 %v192_v30, %v186_v24  ;;  %v210_v2 = vld [vmem:[%s3072_s0 + $0x610] sm:$0xff]  ;;  %v461_v5 = vadd.f32 %v460_v56, %v90_v29  ;;  %v276_v9 = vld [vmem:[%s3072_s0 + $0x820] sm:$0xff] }
  0x32   :  { %v1016_v34 = vpack.c.bf16 %v872_v19, %v872_v19  ;;  %v386_v4 = vrot.slane %v385_v55, 4  ;;  %v696_v6 = vsel %vm357_vm0, %v222_v31, 0.0  ;;  %v270_v8 = vld [vmem:[%s3072_s0 + $0x7f0] sm:$0xff]  ;;  %v538_v10 = vadd.f32 %v537_v61, %v126_v36  ;;  %v216_v13 = vld [vmem:[%s3072_s0 + $0x640] sm:$0xff] }
  0x33   :  { %1530 = vmatpush1.bf16.xpose.msra.mxu0 %v1688_v53  ;;  %v1208_v50 = vsel %vm1184_vm5, %v1161_v35, %v1207_v28  ;;  %v204_v53 = vld [vmem:[%s3072_s0 + $0x5e0] sm:$0xff]  ;;  %v950_v57 = vadd.f32 %v949_v43, %v948_v27  ;;  %v615_v11 = vadd.f32 %v614_v62, %v162_v37  ;;  %v692_v12 = vadd.f32 %v691_v63, %v198_v38  ;;  %v246_v14 = vld [vmem:[%s3072_s0 + $0x730] sm:$0xff] }
  0x34   :  { %1531 = vmatprep.subr.bf16.mxu0 %v1689_v60  ;;  %v1167_v49 = vunpack.c.l.b16 %v1016_v34  ;;  %v264_v60 = vld [vmem:[%s3072_s0 + $0x7c0] sm:$0x1]  ;;  %v387_v15 = vadd.f32 %v386_v4, %v385_v55  ;;  %v463_v16 = vadd.f32 %v2076_v18, %v461_v5  ;;  %v769_v17 = vadd.f32 %v234_v54, %v228_v44  ;;  %v282_v22 = vld [vmem:[%s3072_s0 + $0x850] sm:$0xff] }
  0x35   :  { %v1022_v7 = vpack.c.bf16 %v950_v57, %v950_v57  ;;  %v774_v19 = vsel %vm357_vm0, %v264_v60, 0.0  ;;  %v252_v21 = vld [vmem:[%s3072_s0 + $0x760] sm:$0xff]  ;;  %v539_v23 = vadd.f32 %v538_v10, %v132_v51  ;;  %v616_v24 = vadd.f32 %v615_v11, %v168_v52  ;;  %v1710_v30 = vld [vmem:[%s3073_s1 + $0x94] ss:$24 sps:$4 sm:$0xff]   ;;  %v306_v34 = vld [vmem:[%s3072_s0 + $0x910] sm:$0x1] }
  0x36   :  { %v1209_v59 = vsel %vm1186_vm6, %v1167_v49, %v1208_v50  ;;  %v693_v25 = vadd.f32 %v692_v12, %v204_v53  ;;  %v1706_v26 = vld [vmem:[%s3073_s1 + $0x60] ss:$24 sps:$4 sm:$0xff]   ;;  %v388_v18 = vrot.slane %v387_v15, 2  ;;  %v464_v27 = vrot.slane %v463_v16, 4  ;;  %v258_v32 = vld [vmem:[%s3072_s0 + $0x790] sm:$0xff] }
  0x37   :  { %v1173_v20 = vunpack.c.l.b16 %v1022_v7  ;;  %v770_v28 = vadd.f32 %v769_v17, %v240_v3  ;;  %v847_v29 = vadd.f32 %v276_v9, %v270_v8  ;;  %v541_v35 = vadd.f32 %v2101_v33, %v539_v23  ;;  %v288_v39 = vld [vmem:[%s3072_s0 + $0x880] sm:$0xff]  ;;  %v318_v44 = vld [vmem:[%s3072_s0 + $0x970] sm:$0xff]  ;;  %1482 = vmatpush1.bf16.xpose.msra.mxu1 %v1706_v26  ;;  %v17_v26 = vld [vmem:[%s3072_s0 + $0x8] sm:$0xff] }
  0x38   :  { %v617_v36 = vadd.f32 %v616_v24, %v174_v1  ;;  %v694_v37 = vadd.f32 %v693_v25, %v210_v2  ;;  %v389_v40 = vadd.f32 %v388_v18, %v387_v15  ;;  %v465_v41 = vadd.f32 %v464_v27, %v463_v16  ;;  %v312_v43 = vld [vmem:[%s3072_s0 + $0x940] sm:$0xff]  ;;  %v294_v49 = vld [vmem:[%s3072_s0 + $0x8b0] sm:$0xff]  ;;  %1483 = vmatprep.subr.bf16.mxu1 %v1710_v30  ;;  %v23_v18 = vld [vmem:[%s3072_s0 + $0x38] sm:$0xff] }
  0x39   :  { %v1210_v31 = vsel %vm1188_vm7, %v1173_v20, %v1209_v59  ;;  %v771_v42 = vadd.f32 %v770_v28, %v246_v14  ;;  %v542_v45 = vrot.slane %v541_v35, 4  ;;  %v324_v50 = vld [vmem:[%s3072_s0 + $0x9a0] sm:$0xff]  ;;  %v852_v54 = vsel %vm357_vm0, %v306_v34, 0.0  ;;  %v330_v61 = vld [vmem:[%s3072_s0 + $0x9d0] sm:$0xff] }
  0x3a   :  { %v1228_v38 = vpack.c.b16 %v1210_v31, %v1210_v31  ;;  %v619_v33 = vadd.f32 %v2122_v47, %v617_v36  ;;  %v695_v46 = vadd.f32 %v694_v37, %v216_v13  ;;  %v390_v51 = vrot.slane %v389_v40, 1  ;;  %v348_v47 = vld [vmem:[%s3072_s0 + $0xa60] sm:$0x1]  ;;  %v1712_v5 = vld [vmem:[%s3073_s1 + $0x90] ss:$24 sps:$4 sm:$0xff]  }
  0x3b   :  { %1532 = vmatpush1.bf16.xpose.msra.mxu0 %v1691_v48  ;;  %v848_v48 = vadd.f32 %v847_v29, %v282_v22  ;;  %v466_v52 = vrot.slane %v465_v41, 2  ;;  %v772_v53 = vadd.f32 %v771_v42, %v252_v21  ;;  %v543_v55 = vadd.f32 %v542_v45, %v541_v35  ;;  %v300_v60 = vld [vmem:[%s3072_s0 + $0x8e0] sm:$0xff]  ;;  %v29_v36 = vld [vmem:[%s3072_s0 + $0x68] sm:$0xff] }
  0x3c   :  { %1557 = vmatprep.subr.bf16.mxu0 %v1697_v58  ;;  %1549 = vmatprep.mubr.bf16.mxu0 %v1228_v38  ;;  %v620_v56 = vrot.slane %v619_v33, 4  ;;  %v697_v57 = vadd.f32 %v696_v6, %v695_v46  ;;  %v391_v62 = vadd.f32 %v390_v51, %v389_v40  ;;  %v925_v59 = vadd.f32 %v318_v44, %v312_v43  ;;  %v1716_v10 = vld [vmem:[%s3073_s1 + $0xc4] ss:$24 sps:$4 sm:$0xff]   ;;  %v1718_v45 = vld [vmem:[%s3073_s1 + $0xc0] ss:$24 sps:$4 sm:$0xff]  }
  0x3d   :  { %v849_v58 = vadd.f32 %v848_v48, %v288_v39  ;;  %v467_v63 = vadd.f32 %v466_v52, %v465_v41  ;;  %v773_v0 = vadd.f32 %v772_v53, %v258_v32  ;;  %v544_v1 = vrot.slane %v543_v55, 2  ;;  %v336_v11 = vld [vmem:[%s3072_s0 + $0xa00] sm:$0xff]  ;;  %v53_v46 = vld [vmem:[%s3072_s0 + $0x128] sm:$0x1]  ;;  %v1722_v51 = vld [vmem:[%s3073_s1 + $0xf4] ss:$24 sps:$4 sm:$0xff]  }
  0x3e   :  { %v621_v2 = vadd.f32 %v620_v56, %v619_v33  ;;  %v698_v3 = vrot.slane %v697_v57, 4  ;;  %v926_v8 = vadd.f32 %v925_v59, %v324_v50  ;;  %v930_v9 = vsel %vm357_vm0, %v348_v47, 0.0  ;;  %v35_v33 = vld [vmem:[%s3072_s0 + $0x98] sm:$0xff]  ;;  %v41_v56 = vld [vmem:[%s3072_s0 + $0xc8] sm:$0xff] }
  0x3f   :  { %v850_v4 = vadd.f32 %v849_v58, %v294_v49  ;;  %v468_v6 = vrot.slane %v467_v63, 1  ;;  %v775_v7 = vadd.f32 %v774_v19, %v773_v0  ;;  %v545_v12 = vadd.f32 %v544_v1, %v543_v55  ;;  %v342_v19 = vld [vmem:[%s3072_s0 + $0xa30] sm:$0xff]  ;;  %1484 = vmatpush1.bf16.xpose.msra.mxu1 %v1712_v5  ;;  %v65_v58 = vld [vmem:[%s3072_s0 + $0x188] sm:$0xff]  ;;  %v71_v5 = vld [vmem:[%s3072_s0 + $0x1b8] sm:$0xff] }
  0x40   :  { %v622_v13 = vrot.slane %v621_v2, 2  ;;  %v699_v14 = vadd.f32 %v698_v3, %v697_v57  ;;  %v927_v20 = vadd.f32 %v926_v8, %v330_v61  ;;  %v979_v21 = vpack.c.bf16 %v391_v62, %v391_v62  ;;  %1485 = vmatprep.subr.bf16.mxu1 %v1716_v10  ;;  %v59_v57 = vld [vmem:[%s3072_s0 + $0x158] sm:$0xff]  ;;  %v101_v8 = vld [vmem:[%s3072_s0 + $0x2a8] sm:$0xff] }
  0x41   :  { %v851_v15 = vadd.f32 %v850_v4, %v300_v60  ;;  %v469_v16 = vadd.f32 %v468_v6, %v467_v63  ;;  %v776_v17 = vrot.slane %v775_v7, 4  ;;  %v546_v22 = vrot.slane %v545_v12, 1  ;;  %v95_v62 = vld [vmem:[%s3072_s0 + $0x278] sm:$0x1]  ;;  %v137_v10 = vld [vmem:[%s3072_s0 + $0x3c8] sm:$0x1] }
  0x42   :  { %v623_v23 = vadd.f32 %v622_v13, %v621_v2  ;;  %v700_v24 = vrot.slane %v699_v14, 2  ;;  %v928_v28 = vadd.f32 %v927_v20, %v336_v11  ;;  %v1130_v30 = vunpack.c.l.b16 %v979_v21  ;;  %v47_v4 = vld [vmem:[%s3072_s0 + $0xf8] sm:$0xff]  ;;  %v113_v20 = vld [vmem:[%s3072_s0 + $0x308] sm:$0xff] }
  0x43   :  { %v853_v25 = vadd.f32 %v852_v54, %v851_v15  ;;  %v777_v27 = vadd.f32 %v776_v17, %v775_v7  ;;  %v985_v29 = vpack.c.bf16 %v469_v16, %v469_v16  ;;  %v547_v31 = vadd.f32 %v546_v22, %v545_v12  ;;  %v1724_v16 = vld [vmem:[%s3073_s1 + $0xf0] ss:$24 sps:$4 sm:$0xff]  }
  0x44   :  { %v624_v32 = vrot.slane %v623_v23, 1  ;;  %v701_v34 = vadd.f32 %v700_v24, %v699_v14  ;;  %v929_v38 = vadd.f32 %v928_v28, %v342_v19  ;;  %v366_v40 = vadd.f32 %v23_v18, %v17_v26  ;;  %v77_v17 = vld [vmem:[%s3072_s0 + $0x1e8] sm:$0xff] }
  0x45   :  { %v854_v35 = vrot.slane %v853_v25, 4  ;;  %v778_v37 = vrot.slane %v777_v27, 2  ;;  %v1136_v39 = vunpack.c.l.b16 %v985_v29  ;;  %v991_v44 = vpack.c.bf16 %v547_v31, %v547_v31  ;;  %v149_v24 = vld [vmem:[%s3072_s0 + $0x428] sm:$0xff]  ;;  %v1728_v29 = vld [vmem:[%s3073_s1 + $0x124] ss:$24 sps:$4 sm:$0xff]  }
  0x46   :  { %v625_v41 = vadd.f32 %v624_v32, %v623_v23  ;;  %v702_v42 = vrot.slane %v701_v34, 1  ;;  %v931_v49 = vadd.f32 %v930_v9, %v929_v38  ;;  %v367_v52 = vadd.f32 %v366_v40, %v29_v36  ;;  %v107_v9 = vld [vmem:[%s3072_s0 + $0x2d8] sm:$0xff]  ;;  %v185_v38 = vld [vmem:[%s3072_s0 + $0x548] sm:$0xff] }
  0x47   :  { %v855_v43 = vadd.f32 %v854_v35, %v853_v25  ;;  %v779_v48 = vadd.f32 %v778_v37, %v777_v27  ;;  %v1197_v50 = vsel %vm1176_vm1, %v1136_v39, %v1130_v30  ;;  %v1142_v55 = vunpack.c.l.b16 %v991_v44  ;;  %1486 = vmatpush1.bf16.xpose.msra.mxu1 %v1718_v45  ;;  %v143_v23 = vld [vmem:[%s3072_s0 + $0x3f8] sm:$0xff]  ;;  %v221_v44 = vld [vmem:[%s3072_s0 + $0x668] sm:$0x1] }
  0x48   :  { %v703_v53 = vadd.f32 %v702_v42, %v701_v34  ;;  %v997_v47 = vpack.c.bf16 %v625_v41, %v625_v41  ;;  %v932_v61 = vrot.slane %v931_v49, 4  ;;  %v368_v63 = vadd.f32 %v367_v52, %v35_v33  ;;  %1487 = vmatprep.subr.bf16.mxu1 %v1722_v51  ;;  %v179_v25 = vld [vmem:[%s3072_s0 + $0x518] sm:$0x1]  ;;  %v161_v51 = vld [vmem:[%s3072_s0 + $0x488] sm:$0xff] }
  0x49   :  { %v856_v54 = vrot.slane %v855_v43, 2  ;;  %v780_v60 = vrot.slane %v779_v48, 1  ;;  %v371_v0 = vsel %vm357_vm0, %v53_v46, 0.0  ;;  %v1198_v3 = vsel %vm1178_vm2, %v1142_v55, %v1197_v50  ;;  %v83_v30 = vld [vmem:[%s3072_s0 + $0x218] sm:$0xff]  ;;  %v125_v50 = vld [vmem:[%s3072_s0 + $0x368] sm:$0xff] }
  0x4a   :  { %v1003_v1 = vpack.c.bf16 %v703_v53, %v703_v53  ;;  %v1148_v2 = vunpack.c.l.b16 %v997_v47  ;;  %v933_v7 = vadd.f32 %v932_v61, %v931_v49  ;;  %v369_v11 = vadd.f32 %v368_v63, %v41_v56  ;;  %v119_v31 = vld [vmem:[%s3072_s0 + $0x338] sm:$0xff]  ;;  %v197_v52 = vld [vmem:[%s3072_s0 + $0x5a8] sm:$0xff] }
  0x4b   :  { %v857_v59 = vadd.f32 %v856_v54, %v855_v43  ;;  %v781_v6 = vadd.f32 %v780_v60, %v779_v48  ;;  %v444_v12 = vadd.f32 %v65_v58, %v59_v57  ;;  %v449_v21 = vsel %vm357_vm0, %v95_v62, 0.0  ;;  %v155_v37 = vld [vmem:[%s3072_s0 + $0x458] sm:$0xff]  ;;  %v89_v43 = vld [vmem:[%s3072_s0 + $0x248] sm:$0xff] }
  0x4c   :  { %v1154_v14 = vunpack.c.l.b16 %v1003_v1  ;;  %v1199_v15 = vsel %vm1180_vm3, %v1148_v2, %v1198_v3  ;;  %v934_v19 = vrot.slane %v933_v7, 2  ;;  %v370_v26 = vadd.f32 %v369_v11, %v47_v4  ;;  %v191_v39 = vld [vmem:[%s3072_s0 + $0x578] sm:$0xff]  ;;  %v233_v57 = vld [vmem:[%s3072_s0 + $0x6c8] sm:$0xff] }
  0x4d   :  { %v858_v13 = vrot.slane %v857_v59, 1  ;;  %v1009_v22 = vpack.c.bf16 %v781_v6, %v781_v6  ;;  %v445_v18 = vadd.f32 %v444_v12, %v71_v5  ;;  %v522_v32 = vadd.f32 %v107_v9, %v101_v8  ;;  %v131_v55 = vld [vmem:[%s3072_s0 + $0x398] sm:$0xff]  ;;  %v173_v5 = vld [vmem:[%s3072_s0 + $0x4e8] sm:$0xff] }
  0x4e   :  { %v1200_v28 = vsel %vm1182_vm4, %v1154_v14, %v1199_v15  ;;  %v2316_v34 = vsel %vm357_vm0, %v137_v10, 0.0  ;;  %v935_v35 = vadd.f32 %v934_v19, %v933_v7  ;;  %v372_v40 = vadd.f32 %v371_v0, %v370_v26  ;;  %v227_v56 = vld [vmem:[%s3072_s0 + $0x698] sm:$0xff]  ;;  %v209_v11 = vld [vmem:[%s3072_s0 + $0x608] sm:$0xff] }
  0x4f   :  { %v859_v27 = vadd.f32 %v858_v13, %v857_v59  ;;  %v1160_v36 = vunpack.c.l.b16 %v1009_v22  ;;  %v446_v41 = vadd.f32 %v445_v18, %v77_v17  ;;  %v523_v45 = vadd.f32 %v522_v32, %v113_v20  ;;  %1488 = vmatpush1.bf16.xpose.msra.mxu1 %v1724_v16  ;;  %v167_v63 = vld [vmem:[%s3072_s0 + $0x4b8] sm:$0xff]  ;;  %v269_v12 = vld [vmem:[%s3072_s0 + $0x7e8] sm:$0xff] }
  0x50   :  { %v600_v33 = vadd.f32 %v149_v24, %v143_v23  ;;  %v2334_v46 = vsel %vm357_vm0, %v179_v25, 0.0  ;;  %v936_v48 = vrot.slane %v935_v35, 1  ;;  %v373_v53 = vrot.slane %v372_v40, 4  ;;  %1489 = vmatprep.subr.bf16.mxu1 %v1728_v29  ;;  %v203_v0 = vld [vmem:[%s3072_s0 + $0x5d8] sm:$0xff]  ;;  %v245_v20 = vld [vmem:[%s3072_s0 + $0x728] sm:$0xff] }
  0x51   :  { %v1015_v42 = vpack.c.bf16 %v859_v27, %v859_v27  ;;  %v1201_v49 = vsel %vm1184_vm5, %v1160_v36, %v1200_v28  ;;  %v447_v54 = vadd.f32 %v446_v41, %v83_v30  ;;  %v524_v58 = vadd.f32 %v523_v45, %v119_v31  ;;  %v263_v59 = vld [vmem:[%s3072_s0 + $0x7b8] sm:$0x1]  ;;  %v1734_v26 = vld [vmem:[%s3073_s1 + $0x154] ss:$24 sps:$4 sm:$0xff]   ;;  %v1695_v29 = vld [vmem:[%s3073_s1 + $0x10] ss:$24 sps:$4 sm:$0xff]  }
  0x52   :  { %v601_v60 = vadd.f32 %v600_v33, %v155_v37  ;;  %v678_v61 = vadd.f32 %v191_v39, %v185_v38  ;;  %v937_v62 = vadd.f32 %v936_v48, %v935_v35  ;;  %v374_v1 = vadd.f32 %v373_v53, %v372_v40  ;;  %v239_v6 = vld [vmem:[%s3072_s0 + $0x6f8] sm:$0xff]  ;;  %v281_v31 = vld [vmem:[%s3072_s0 + $0x848] sm:$0xff] }
  0x53   :  { %v1166_v47 = vunpack.c.l.b16 %v1015_v42  ;;  %v448_v2 = vadd.f32 %v447_v54, %v89_v43  ;;  %v683_v3 = vsel %vm357_vm0, %v221_v44, 0.0  ;;  %v525_v7 = vadd.f32 %v524_v58, %v125_v50  ;;  %v275_v13 = vld [vmem:[%s3072_s0 + $0x818] sm:$0xff]  ;;  %v257_v40 = vld [vmem:[%s3072_s0 + $0x788] sm:$0xff] }
  0x54   :  { %v602_v8 = vadd.f32 %v601_v60, %v161_v51  ;;  %v679_v9 = vadd.f32 %v678_v61, %v197_v52  ;;  %v1021_v10 = vpack.c.bf16 %v937_v62, %v937_v62  ;;  %v375_v14 = vrot.slane %v374_v1, 2  ;;  %v1730_v17 = vld [vmem:[%s3073_s1 + $0x120] ss:$24 sps:$4 sm:$0xff]   ;;  %v1703_v39 = vld [vmem:[%s3073_s1 + $0x44] ss:$24 sps:$4 sm:$0xff]   ;;  %v317_v48 = vld [vmem:[%s3072_s0 + $0x968] sm:$0xff] }
  0x55   :  { %v1202_v4 = vsel %vm1186_vm6, %v1166_v47, %v1201_v49  ;;  %v450_v15 = vadd.f32 %v449_v21, %v448_v2  ;;  %v756_v16 = vadd.f32 %v233_v57, %v227_v56  ;;  %v526_v19 = vadd.f32 %v525_v7, %v131_v55  ;;  %v215_v21 = vld [vmem:[%s3072_s0 + $0x638] sm:$0xff]  ;;  %v305_v41 = vld [vmem:[%s3072_s0 + $0x908] sm:$0x1] }
  0x56   :  { %v603_v22 = vadd.f32 %v602_v8, %v167_v63  ;;  %v680_v23 = vadd.f32 %v679_v9, %v203_v0  ;;  %v761_v24 = vsel %vm357_vm0, %v263_v59, 0.0  ;;  %v1172_v25 = vunpack.c.l.b16 %v1021_v10  ;;  %v251_v30 = vld [vmem:[%s3072_s0 + $0x758] sm:$0xff]  ;;  %v293_v56 = vld [vmem:[%s3072_s0 + $0x8a8] sm:$0xff] }
  0x57   :  { %v376_v18 = vadd.f32 %v375_v14, %v374_v1  ;;  %v451_v27 = vrot.slane %v450_v15, 4  ;;  %v757_v28 = vadd.f32 %v756_v16, %v239_v6  ;;  %v528_v32 = vadd.f32 %v2316_v34, %v526_v19  ;;  %1490 = vmatpush1.bf16.xpose.msra.mxu1 %v1730_v17  ;;  %v287_v45 = vld [vmem:[%s3072_s0 + $0x878] sm:$0xff]  ;;  %v1736_v62 = vld [vmem:[%s3073_s1 + $0x150] ss:$24 sps:$4 sm:$0xff]  }
  0x58   :  { %v604_v35 = vadd.f32 %v603_v22, %v173_v5  ;;  %v681_v36 = vadd.f32 %v680_v23, %v209_v11  ;;  %v834_v37 = vadd.f32 %v275_v13, %v269_v12  ;;  %v1203_v38 = vsel %vm1188_vm7, %v1172_v25, %v1202_v4  ;;  %v311_v33 = vld [vmem:[%s3072_s0 + $0x938] sm:$0xff]  ;;  %1491 = vmatprep.subr.bf16.mxu1 %v1734_v26  ;;  %v22_v25 = vld [vmem:[%s3072_s0 + $0x30] sm:$0xff] }
  0x59   :  { %v377_v42 = vrot.slane %v376_v18, 1  ;;  %v452_v43 = vadd.f32 %v451_v27, %v450_v15  ;;  %v758_v34 = vadd.f32 %v757_v28, %v245_v20  ;;  %v1227_v44 = vpack.c.b16 %v1203_v38, %v1203_v38  ;;  %v347_v52 = vld [vmem:[%s3072_s0 + $0xa58] sm:$0x1]  ;;  %v1709_v26 = vld [vmem:[%s3073_s1 + $0x74] ss:$24 sps:$4 sm:$0xff]  }
  0x5a   :  { %v529_v49 = vrot.slane %v528_v32, 4  ;;  %v606_v50 = vadd.f32 %v2334_v46, %v604_v35  ;;  %v682_v51 = vadd.f32 %v681_v36, %v215_v21  ;;  %v835_v55 = vadd.f32 %v834_v37, %v281_v31  ;;  %v323_v57 = vld [vmem:[%s3072_s0 + $0x998] sm:$0xff]  ;;  %v341_v21 = vld [vmem:[%s3072_s0 + $0xa28] sm:$0xff]  ;;  %v28_v36 = vld [vmem:[%s3072_s0 + $0x60] sm:$0xff] }
  0x5b   :  { %v378_v53 = vadd.f32 %v377_v42, %v376_v18  ;;  %v453_v54 = vrot.slane %v452_v43, 2  ;;  %v759_v47 = vadd.f32 %v758_v34, %v251_v30  ;;  %1550 = vmatmul.mubr.bf16.vlgmr.msra.gmra.mrb[0].mxu0 %v1227_v44  ;;  %v839_v61 = vsel %vm357_vm0, %v305_v41, 0.0  ;;  %v299_v2 = vld [vmem:[%s3072_s0 + $0x8d8] sm:$0xff]  ;;  %v34_v44 = vld [vmem:[%s3072_s0 + $0x90] sm:$0xff] }
  0x5c   :  { %v530_v46 = vadd.f32 %v529_v49, %v528_v32  ;;  %v607_v58 = vrot.slane %v606_v50, 4  ;;  %v684_v60 = vadd.f32 %v683_v3, %v682_v51  ;;  %1558 = vmatpush1.bf16.xpose.msra.mxu0 %v1695_v29  ;;  %v836_v59 = vadd.f32 %v835_v55, %v287_v45  ;;  %v329_v3 = vld [vmem:[%s3072_s0 + $0x9c8] sm:$0xff]  ;;  %v335_v12 = vld [vmem:[%s3072_s0 + $0x9f8] sm:$0xff]  ;;  %v52_v49 = vld [vmem:[%s3072_s0 + $0x120] sm:$0x1] }
  0x5d   :  { %v454_v63 = vadd.f32 %v453_v54, %v452_v43  ;;  %v760_v0 = vadd.f32 %v759_v47, %v257_v40  ;;  %v912_v1 = vadd.f32 %v317_v48, %v311_v33  ;;  %1559 = vmatprep.subr.bf16.mxu0 %v1703_v39  ;;  %v917_v7 = vsel %vm357_vm0, %v347_v52, 0.0  ;;  %v1701_v17 = vld [vmem:[%s3073_s1 + $0x40] ss:$24 sps:$4 sm:$0xff]   ;;  %v1707_v51 = vld [vmem:[%s3073_s1 + $0x70] ss:$24 sps:$4 sm:$0xff]  }
  0x5e   :  { %v531_v4 = vrot.slane %v530_v46, 2  ;;  %v608_v5 = vadd.f32 %v607_v58, %v606_v50  ;;  %v685_v6 = vrot.slane %v684_v60, 4  ;;  %v837_v10 = vadd.f32 %v836_v59, %v293_v56  ;;  %v40_v55 = vld [vmem:[%s3072_s0 + $0xc0] sm:$0xff]  ;;  %v46_v58 = vld [vmem:[%s3072_s0 + $0xf0] sm:$0xff] }
  0x5f   :  { %v455_v8 = vrot.slane %v454_v63, 1  ;;  %v762_v9 = vadd.f32 %v761_v24, %v760_v0  ;;  %v913_v11 = vadd.f32 %v912_v1, %v323_v57  ;;  %v978_v16 = vpack.c.bf16 %v378_v53, %v378_v53  ;;  %v16_v24 = vld [vmem:[%s3072_s0] sm:$0xff]  ;;  %1492 = vmatpush1.bf16.xpose.msra.mxu1 %v1736_v62  ;;  %v94_v1 = vld [vmem:[%s3072_s0 + $0x270] sm:$0x1] }
  0x60   :  { %v532_v13 = vadd.f32 %v531_v4, %v530_v46  ;;  %v609_v14 = vrot.slane %v608_v5, 2  ;;  %v686_v15 = vadd.f32 %v685_v6, %v684_v60  ;;  %v838_v22 = vadd.f32 %v837_v10, %v299_v2  ;;  %v58_v60 = vld [vmem:[%s3072_s0 + $0x150] sm:$0xff] }
  0x61   :  { %v456_v20 = vadd.f32 %v455_v8, %v454_v63  ;;  %v763_v19 = vrot.slane %v762_v9, 4  ;;  %v914_v23 = vadd.f32 %v913_v11, %v329_v3  ;;  %v1129_v29 = vunpack.c.l.b16 %v978_v16  ;;  %v1715_v3 = vld [vmem:[%s3073_s1 + $0xa4] ss:$24 sps:$4 sm:$0xff]  }
  0x62   :  { %v533_v18 = vrot.slane %v532_v13, 1  ;;  %v610_v27 = vadd.f32 %v609_v14, %v608_v5  ;;  %v687_v28 = vrot.slane %v686_v15, 2  ;;  %v840_v31 = vadd.f32 %v839_v61, %v838_v22  ;;  %v64_v61 = vld [vmem:[%s3072_s0 + $0x180] sm:$0xff] }
  0x63   :  { %v764_v30 = vadd.f32 %v763_v19, %v762_v9  ;;  %v915_v32 = vadd.f32 %v914_v23, %v335_v12  ;;  %v984_v35 = vpack.c.bf16 %v456_v20, %v456_v20  ;;  %v352_v40 = vadd.f32 %v22_v25, %v16_v24  ;;  %v100_v12 = vld [vmem:[%s3072_s0 + $0x2a0] sm:$0xff] }
  0x64   :  { %v534_v37 = vadd.f32 %v533_v18, %v532_v13  ;;  %v611_v38 = vrot.slane %v610_v27, 1  ;;  %v688_v39 = vadd.f32 %v687_v28, %v686_v15  ;;  %1560 = vmatpush1.bf16.xpose.msra.mxu0 %v1701_v17  ;;  %v841_v42 = vrot.slane %v840_v31, 4  ;;  %v106_v13 = vld [vmem:[%s3072_s0 + $0x2d0] sm:$0xff]  ;;  %v136_v14 = vld [vmem:[%s3072_s0 + $0x3c0] sm:$0x1] }
  0x65   :  { %v765_v41 = vrot.slane %v764_v30, 2  ;;  %v916_v43 = vadd.f32 %v915_v32, %v341_v21  ;;  %v1135_v34 = vunpack.c.l.b16 %v984_v35  ;;  %1561 = vmatprep.subr.bf16.mxu0 %v1709_v26  ;;  %v353_v50 = vadd.f32 %v352_v40, %v28_v36  ;;  %v76_v20 = vld [vmem:[%s3072_s0 + $0x1e0] sm:$0xff]  ;;  %v142_v21 = vld [vmem:[%s3072_s0 + $0x3f0] sm:$0xff] }
  0x66   :  { %v612_v45 = vadd.f32 %v611_v38, %v610_v27  ;;  %v689_v33 = vrot.slane %v688_v39, 1  ;;  %v990_v48 = vpack.c.bf16 %v534_v37, %v534_v37  ;;  %v842_v53 = vadd.f32 %v841_v42, %v840_v31  ;;  %v112_v19 = vld [vmem:[%s3072_s0 + $0x300] sm:$0xff]  ;;  %v178_v27 = vld [vmem:[%s3072_s0 + $0x510] sm:$0x1] }
  0x67   :  { %v766_v52 = vadd.f32 %v765_v41, %v764_v30  ;;  %v918_v54 = vadd.f32 %v917_v7, %v916_v43  ;;  %v1190_v47 = vsel %vm1176_vm1, %v1135_v34, %v1129_v29  ;;  %v354_v62 = vadd.f32 %v353_v50, %v34_v44  ;;  %v70_v7 = vld [vmem:[%s3072_s0 + $0x1b0] sm:$0xff]  ;;  %v148_v18 = vld [vmem:[%s3072_s0 + $0x420] sm:$0xff] }
  0x68   :  { %v690_v56 = vadd.f32 %v689_v33, %v688_v39  ;;  %v996_v57 = vpack.c.bf16 %v612_v45, %v612_v45  ;;  %v1141_v46 = vunpack.c.l.b16 %v990_v48  ;;  %v843_v0 = vrot.slane %v842_v53, 2  ;;  %v82_v30 = vld [vmem:[%s3072_s0 + $0x210] sm:$0xff]  ;;  %v1713_v37 = vld [vmem:[%s3073_s1 + $0xa0] ss:$24 sps:$4 sm:$0xff]  }
  0x69   :  { %v767_v63 = vrot.slane %v766_v52, 1  ;;  %v919_v59 = vrot.slane %v918_v54, 4  ;;  %v358_v2 = vsel %vm357_vm0, %v52_v49, 0.0  ;;  %v355_v8 = vadd.f32 %v354_v62, %v40_v55  ;;  %v118_v31 = vld [vmem:[%s3072_s0 + $0x330] sm:$0xff]  ;;  %v184_v42 = vld [vmem:[%s3072_s0 + $0x540] sm:$0xff] }
  0x6a   :  { %v1002_v4 = vpack.c.bf16 %v690_v56, %v690_v56  ;;  %v1147_v5 = vunpack.c.l.b16 %v996_v57  ;;  %v1191_v6 = vsel %vm1178_vm2, %v1141_v46, %v1190_v47  ;;  %v844_v10 = vadd.f32 %v843_v0, %v842_v53  ;;  %v154_v41 = vld [vmem:[%s3072_s0 + $0x450] sm:$0xff]  ;;  %v88_v44 = vld [vmem:[%s3072_s0 + $0x240] sm:$0xff] }
  0x6b   :  { %v768_v9 = vadd.f32 %v767_v63, %v766_v52  ;;  %v920_v11 = vadd.f32 %v919_v59, %v918_v54  ;;  %v431_v15 = vadd.f32 %v64_v61, %v58_v60  ;;  %v356_v22 = vadd.f32 %v355_v8, %v46_v58  ;;  %v190_v43 = vld [vmem:[%s3072_s0 + $0x570] sm:$0xff]  ;;  %v220_v45 = vld [vmem:[%s3072_s0 + $0x660] sm:$0x1] }
  0x6c   :  { %v1153_v16 = vunpack.c.l.b16 %v1002_v4  ;;  %v1192_v17 = vsel %vm1180_vm3, %v1147_v5, %v1191_v6  ;;  %v436_v23 = vsel %vm357_vm0, %v94_v1, 0.0  ;;  %1562 = vmatpush1.bf16.xpose.msra.mxu0 %v1707_v51  ;;  %v845_v24 = vrot.slane %v844_v10, 1  ;;  %v124_v54 = vld [vmem:[%s3072_s0 + $0x360] sm:$0xff]  ;;  %v1721_v57 = vld [vmem:[%s3073_s1 + $0xd4] ss:$24 sps:$4 sm:$0xff]  }
  0x6d   :  { %v921_v25 = vrot.slane %v920_v11, 2  ;;  %v1008_v26 = vpack.c.bf16 %v768_v9, %v768_v9  ;;  %v432_v28 = vadd.f32 %v431_v15, %v70_v7  ;;  %1563 = vmatprep.subr.bf16.mxu0 %v1715_v3  ;;  %v359_v32 = vadd.f32 %v358_v2, %v356_v22  ;;  %v160_v47 = vld [vmem:[%s3072_s0 + $0x480] sm:$0xff]  ;;  %v226_v46 = vld [vmem:[%s3072_s0 + $0x690] sm:$0xff] }
  0x6e   :  { %v1193_v29 = vsel %vm1182_vm4, %v1153_v16, %v1192_v17  ;;  %v509_v35 = vadd.f32 %v106_v13, %v100_v12  ;;  %v2532_v36 = vsel %vm357_vm0, %v136_v14, 0.0  ;;  %v846_v38 = vadd.f32 %v845_v24, %v844_v10  ;;  %v196_v55 = vld [vmem:[%s3072_s0 + $0x5a0] sm:$0xff]  ;;  %v130_v1 = vld [vmem:[%s3072_s0 + $0x390] sm:$0xff] }
  0x6f   :  { %v922_v39 = vadd.f32 %v921_v25, %v920_v11  ;;  %v1159_v40 = vunpack.c.l.b16 %v1008_v26  ;;  %v433_v34 = vadd.f32 %v432_v28, %v76_v20  ;;  %v360_v33 = vrot.slane %v359_v32, 4  ;;  %v232_v58 = vld [vmem:[%s3072_s0 + $0x6c0] sm:$0xff]  ;;  %v166_v2 = vld [vmem:[%s3072_s0 + $0x4b0] sm:$0xff] }
  0x70   :  { %v510_v48 = vadd.f32 %v509_v35, %v112_v19  ;;  %v587_v49 = vadd.f32 %v148_v18, %v142_v21  ;;  %v2553_v50 = vsel %vm357_vm0, %v178_v27, 0.0  ;;  %v1014_v52 = vpack.c.bf16 %v846_v38, %v846_v38  ;;  %v202_v3 = vld [vmem:[%s3072_s0 + $0x5d0] sm:$0xff]  ;;  %v172_v14 = vld [vmem:[%s3072_s0 + $0x4e0] sm:$0xff] }
  0x71   :  { %v923_v51 = vrot.slane %v922_v39, 1  ;;  %v1194_v53 = vsel %vm1184_vm5, %v1159_v40, %v1193_v29  ;;  %v434_v56 = vadd.f32 %v433_v34, %v82_v30  ;;  %v361_v60 = vadd.f32 %v360_v33, %v359_v32  ;;  %v238_v6 = vld [vmem:[%s3072_s0 + $0x6f0] sm:$0xff]  ;;  %v208_v15 = vld [vmem:[%s3072_s0 + $0x600] sm:$0xff] }
  0x72   :  { %v511_v61 = vadd.f32 %v510_v48, %v118_v31  ;;  %v588_v62 = vadd.f32 %v587_v49, %v154_v41  ;;  %v665_v63 = vadd.f32 %v190_v43, %v184_v42  ;;  %v1165_v59 = vunpack.c.l.b16 %v1014_v52  ;;  %v262_v7 = vld [vmem:[%s3072_s0 + $0x7b0] sm:$0x1]  ;;  %v244_v20 = vld [vmem:[%s3072_s0 + $0x720] sm:$0xff] }
  0x73   :  { %v924_v0 = vadd.f32 %v923_v51, %v922_v39  ;;  %v435_v4 = vadd.f32 %v434_v56, %v88_v44  ;;  %v2584_v5 = vsel %vm357_vm0, %v220_v45, 0.0  ;;  %v362_v8 = vrot.slane %v361_v60, 2  ;;  %v268_v19 = vld [vmem:[%s3072_s0 + $0x7e0] sm:$0xff]  ;;  %v274_v22 = vld [vmem:[%s3072_s0 + $0x810] sm:$0xff] }
  0x74   :  { %v512_v9 = vadd.f32 %v511_v61, %v124_v54  ;;  %v589_v10 = vadd.f32 %v588_v62, %v160_v47  ;;  %v666_v11 = vadd.f32 %v665_v63, %v196_v55  ;;  %1564 = vmatpush1.bf16.xpose.msra.mxu0 %v1713_v37  ;;  %v1195_v13 = vsel %vm1186_vm6, %v1165_v59, %v1194_v53  ;;  %v214_v30 = vld [vmem:[%s3072_s0 + $0x630] sm:$0xff]  ;;  %v280_v32 = vld [vmem:[%s3072_s0 + $0x840] sm:$0xff] }
  0x75   :  { %v1020_v12 = vpack.c.bf16 %v924_v0, %v924_v0  ;;  %v437_v16 = vadd.f32 %v436_v23, %v435_v4  ;;  %v743_v17 = vadd.f32 %v232_v58, %v226_v46  ;;  %1565 = vmatprep.subr.bf16.mxu0 %v1721_v57  ;;  %v363_v24 = vadd.f32 %v362_v8, %v361_v60  ;;  %v1719_v23 = vld [vmem:[%s3073_s1 + $0xd0] ss:$24 sps:$4 sm:$0xff]   ;;  %v304_v41 = vld [vmem:[%s3072_s0 + $0x900] sm:$0x1] }
  0x76   :  { %v513_v25 = vadd.f32 %v512_v9, %v130_v1  ;;  %v590_v26 = vadd.f32 %v589_v10, %v166_v2  ;;  %v667_v21 = vadd.f32 %v666_v11, %v202_v3  ;;  %v748_v29 = vsel %vm357_vm0, %v262_v7, 0.0  ;;  %v250_v31 = vld [vmem:[%s3072_s0 + $0x750] sm:$0xff]  ;;  %v316_v43 = vld [vmem:[%s3072_s0 + $0x960] sm:$0xff] }
  0x77   :  { %v1171_v18 = vunpack.c.l.b16 %v1020_v12  ;;  %v438_v27 = vrot.slane %v437_v16, 4  ;;  %v744_v28 = vadd.f32 %v743_v17, %v238_v6  ;;  %v364_v35 = vrot.slane %v363_v24, 1  ;;  %v310_v42 = vld [vmem:[%s3072_s0 + $0x930] sm:$0xff]  ;;  %v256_v48 = vld [vmem:[%s3072_s0 + $0x780] sm:$0xff] }
  0x78   :  { %v515_v37 = vadd.f32 %v2532_v36, %v513_v25  ;;  %v591_v38 = vadd.f32 %v590_v26, %v172_v14  ;;  %v668_v39 = vadd.f32 %v667_v21, %v208_v15  ;;  %v821_v45 = vadd.f32 %v274_v22, %v268_v19  ;;  %v1727_v36 = vld [vmem:[%s3073_s1 + $0x104] ss:$24 sps:$4 sm:$0xff]   ;;  %v286_v49 = vld [vmem:[%s3072_s0 + $0x870] sm:$0xff]  ;;  %v21_v26 = vld [vmem:[%s3072_s0 + $0x28] sm:$0xff] }
  0x79   :  { %v1196_v40 = vsel %vm1188_vm7, %v1171_v18, %v1195_v13  ;;  %v439_v34 = vadd.f32 %v438_v27, %v437_v16  ;;  %v745_v44 = vadd.f32 %v744_v28, %v244_v20  ;;  %v365_v51 = vadd.f32 %v364_v35, %v363_v24  ;;  %v322_v54 = vld [vmem:[%s3072_s0 + $0x990] sm:$0xff]  ;;  %v292_v58 = vld [vmem:[%s3072_s0 + $0x8a0] sm:$0xff]  ;;  %v27_v21 = vld [vmem:[%s3072_s0 + $0x58] sm:$0xff] }
  0x7a   :  { %v1226_v33 = vpack.c.b16 %v1196_v40, %v1196_v40  ;;  %v516_v52 = vrot.slane %v515_v37, 4  ;;  %v593_v53 = vadd.f32 %v2553_v50, %v591_v38  ;;  %v346_v47 = vld [vmem:[%s3072_s0 + $0xa50] sm:$0x1]  ;;  %v669_v56 = vadd.f32 %v668_v39, %v214_v30  ;;  %v328_v63 = vld [vmem:[%s3072_s0 + $0x9c0] sm:$0xff] }
  0x7b   :  { %v440_v55 = vrot.slane %v439_v34, 2  ;;  %v746_v57 = vadd.f32 %v745_v44, %v250_v31  ;;  %v822_v46 = vadd.f32 %v821_v45, %v280_v32  ;;  %v826_v50 = vsel %vm357_vm0, %v304_v41, 0.0  ;;  %v298_v3 = vld [vmem:[%s3072_s0 + $0x8d0] sm:$0xff]  ;;  %v1725_v13 = vld [vmem:[%s3073_s1 + $0x100] ss:$24 sps:$4 sm:$0xff]  }
  0x7c   :  { %1509 = vmatprep.mubr.bf16.mxu1 %v1226_v33  ;;  %v517_v60 = vadd.f32 %v516_v52, %v515_v37  ;;  %v594_v61 = vrot.slane %v593_v53, 4  ;;  %v899_v62 = vadd.f32 %v316_v43, %v310_v42  ;;  %1566 = vmatpush1.bf16.xpose.msra.mxu0 %v1719_v23  ;;  %v671_v59 = vadd.f32 %v2584_v5, %v669_v56  ;;  %v334_v9 = vld [vmem:[%s3072_s0 + $0x9f0] sm:$0xff]  ;;  %v340_v20 = vld [vmem:[%s3072_s0 + $0xa20] sm:$0xff]  ;;  %v33_v37 = vld [vmem:[%s3072_s0 + $0x88] sm:$0xff] }
  0x7d   :  { %v441_v0 = vadd.f32 %v440_v55, %v439_v34  ;;  %v747_v1 = vadd.f32 %v746_v57, %v256_v48  ;;  %v823_v2 = vadd.f32 %v822_v46, %v286_v49  ;;  %1567 = vmatprep.subr.bf16.mxu0 %v1727_v36  ;;  %v904_v8 = vsel %vm357_vm0, %v346_v47, 0.0  ;;  %v1733_v23 = vld [vmem:[%s3073_s1 + $0x134] ss:$24 sps:$4 sm:$0xff]   ;;  %v39_v45 = vld [vmem:[%s3072_s0 + $0xb8] sm:$0xff]  ;;  %v57_v49 = vld [vmem:[%s3072_s0 + $0x148] sm:$0x1] }
  0x7e   :  { %v518_v4 = vrot.slane %v517_v60, 2  ;;  %v595_v6 = vadd.f32 %v594_v61, %v593_v53  ;;  %v900_v7 = vadd.f32 %v899_v62, %v322_v54  ;;  %v672_v11 = vrot.slane %v671_v59, 4  ;;  %v45_v55 = vld [vmem:[%s3072_s0 + $0xe8] sm:$0xff] }
  0x7f   :  { %v442_v10 = vrot.slane %v441_v0, 1  ;;  %v749_v12 = vadd.f32 %v748_v29, %v747_v1  ;;  %v824_v5 = vadd.f32 %v823_v2, %v292_v58  ;;  %v977_v17 = vpack.c.bf16 %v365_v51, %v365_v51  ;;  %v1731_v56 = vld [vmem:[%s3073_s1 + $0x130] ss:$24 sps:$4 sm:$0xff]   ;;  %v99_v1 = vld [vmem:[%s3072_s0 + $0x298] sm:$0x1] }
  0x80   :  { %v519_v14 = vadd.f32 %v518_v4, %v517_v60  ;;  %v596_v15 = vrot.slane %v595_v6, 2  ;;  %v901_v16 = vadd.f32 %v900_v7, %v328_v63  ;;  %v673_v22 = vadd.f32 %v672_v11, %v671_v59  ;;  %v63_v60 = vld [vmem:[%s3072_s0 + $0x178] sm:$0xff]  ;;  %v69_v61 = vld [vmem:[%s3072_s0 + $0x1a8] sm:$0xff] }
  0x81   :  { %v443_v19 = vadd.f32 %v442_v10, %v441_v0  ;;  %v750_v24 = vrot.slane %v749_v12, 4  ;;  %v825_v25 = vadd.f32 %v824_v5, %v298_v3  ;;  %v1128_v29 = vunpack.c.l.b16 %v977_v17  ;;  %v51_v59 = vld [vmem:[%s3072_s0 + $0x118] sm:$0xff]  ;;  %v105_v5 = vld [vmem:[%s3072_s0 + $0x2c8] sm:$0xff] }
  0x82   :  { %v520_v18 = vrot.slane %v519_v14, 1  ;;  %v597_v27 = vadd.f32 %v596_v15, %v595_v6  ;;  %v902_v28 = vadd.f32 %v901_v16, %v334_v9  ;;  %v674_v30 = vrot.slane %v673_v22, 2  ;;  %v1739_v3 = vld [vmem:[%s3073_s1 + $0x164] ss:$24 sps:$4 sm:$0xff]  }
  0x83   :  { %v751_v31 = vadd.f32 %v750_v24, %v749_v12  ;;  %v827_v32 = vadd.f32 %v826_v50, %v825_v25  ;;  %v983_v35 = vpack.c.bf16 %v443_v19, %v443_v19  ;;  %v418_v41 = vadd.f32 %v27_v21, %v21_v26  ;;  %v117_v19 = vld [vmem:[%s3072_s0 + $0x328] sm:$0xff] }
  0x84   :  { %v521_v38 = vadd.f32 %v520_v18, %v519_v14  ;;  %v598_v39 = vrot.slane %v597_v27, 1  ;;  %v903_v40 = vadd.f32 %v902_v28, %v340_v20  ;;  %1568 = vmatpush1.bf16.xpose.msra.mxu0 %v1725_v13  ;;  %v675_v42 = vadd.f32 %v674_v30, %v673_v22  ;;  %v111_v13 = vld [vmem:[%s3072_s0 + $0x2f8] sm:$0xff]  ;;  %v141_v14 = vld [vmem:[%s3072_s0 + $0x3e8] sm:$0x1] }
  0x85   :  { %v752_v43 = vrot.slane %v751_v31, 2  ;;  %v828_v34 = vrot.slane %v827_v32, 4  ;;  %v1134_v44 = vunpack.c.l.b16 %v983_v35  ;;  %1569 = vmatprep.subr.bf16.mxu0 %v1733_v23  ;;  %v419_v51 = vadd.f32 %v418_v41, %v33_v37  ;;  %v81_v20 = vld [vmem:[%s3072_s0 + $0x208] sm:$0xff]  ;;  %v147_v23 = vld [vmem:[%s3072_s0 + $0x418] sm:$0xff] }
  0x86   :  { %v599_v36 = vadd.f32 %v598_v39, %v597_v27  ;;  %v905_v33 = vadd.f32 %v904_v8, %v903_v40  ;;  %v989_v48 = vpack.c.bf16 %v521_v38, %v521_v38  ;;  %v676_v52 = vrot.slane %v675_v42, 1  ;;  %v75_v8 = vld [vmem:[%s3072_s0 + $0x1d8] sm:$0xff]  ;;  %v153_v18 = vld [vmem:[%s3072_s0 + $0x448] sm:$0xff] }
  0x87   :  { %v753_v53 = vadd.f32 %v752_v43, %v751_v31  ;;  %v829_v54 = vadd.f32 %v828_v34, %v827_v32  ;;  %v1177_v47 = vsel %vm1176_vm1, %v1134_v44, %v1128_v29  ;;  %v420_v50 = vadd.f32 %v419_v51, %v39_v45 }
  0x88   :  { %v906_v57 = vrot.slane %v905_v33, 4  ;;  %v995_v46 = vpack.c.bf16 %v599_v36, %v599_v36  ;;  %v1140_v58 = vunpack.c.l.b16 %v989_v48  ;;  %v677_v62 = vadd.f32 %v676_v52, %v675_v42 }
  0x89   :  { %v754_v63 = vrot.slane %v753_v53, 1  ;;  %v830_v0 = vrot.slane %v829_v54, 2  ;;  %v423_v2 = vsel %vm357_vm0, %v57_v49, 0.0  ;;  %v421_v9 = vadd.f32 %v420_v50, %v45_v55 }
  0x8a   :  { %v907_v4 = vadd.f32 %v906_v57, %v905_v33  ;;  %v1146_v6 = vunpack.c.l.b16 %v995_v46  ;;  %v1179_v7 = vsel %vm1178_vm2, %v1140_v58, %v1177_v47  ;;  %v1001_v12 = vpack.c.bf16 %v677_v62, %v677_v62 }
  0x8b   :  { %v755_v10 = vadd.f32 %v754_v63, %v753_v53  ;;  %v831_v11 = vadd.f32 %v830_v0, %v829_v54  ;;  %v496_v15 = vadd.f32 %v69_v61, %v63_v60  ;;  %v422_v22 = vadd.f32 %v421_v9, %v51_v59 }
  0x8c   :  { %v908_v16 = vrot.slane %v907_v4, 2  ;;  %v1181_v17 = vsel %vm1180_vm3, %v1146_v6, %v1179_v7  ;;  %v501_v24 = vsel %vm357_vm0, %v99_v1, 0.0  ;;  %1570 = vmatpush1.bf16.xpose.msra.mxu0 %v1731_v56  ;;  %v1152_v21 = vunpack.c.l.b16 %v1001_v12 }
  0x8d   :  { %v832_v25 = vrot.slane %v831_v11, 1  ;;  %v1007_v26 = vpack.c.bf16 %v755_v10, %v755_v10  ;;  %v497_v27 = vadd.f32 %v496_v15, %v75_v8 }
  0x8e   :  { %8 = vsyncpa [#allocation3], 0  ;;  %1571 = vmatprep.subr.bf16.mxu0 %v1739_v3  ;;  %v909_v28 = vadd.f32 %v908_v16, %v907_v4  ;;  %v87_v29 = vld [vmem:[%s3072_s0 + $0x238] sm:$0xff]  ;;  %v424_v31 = vadd.f32 %v423_v2, %v422_v22  ;;  %v574_v32 = vadd.f32 %v111_v13, %v105_v5  ;;  %v2744_v35 = vsel %vm357_vm0, %v141_v14, 0.0  ;;  %v93_v40 = vld [vmem:[%s3072_s0 + $0x268] sm:$0xff]  ;;  %s1764_s19 = smov [#allocation2]  }
  0x8f   :  { %v183_v30 = vld [vmem:[%s3072_s0 + $0x538] sm:$0x1]  ;;  %v833_v37 = vadd.f32 %v832_v25, %v831_v11  ;;  %v1158_v38 = vunpack.c.l.b16 %v1007_v26  ;;  %v1183_v39 = vsel %vm1182_vm4, %v1152_v21, %v1181_v17  ;;  %v498_v43 = vadd.f32 %v497_v27, %v81_v20  ;;  %v189_v44 = vld [vmem:[%s3072_s0 + $0x568] sm:$0xff] }
  0x90   :  { %v123_v41 = vld [vmem:[%s3072_s0 + $0x358] sm:$0xff]  ;;  %v910_v34 = vrot.slane %v909_v28, 1  ;;  %v225_v36 = vld [vmem:[%s3072_s0 + $0x688] sm:$0x1]  ;;  %v425_v33 = vrot.slane %v424_v31, 4  ;;  %v575_v48 = vadd.f32 %v574_v32, %v117_v19  ;;  %v652_v49 = vadd.f32 %v153_v18, %v147_v23 }
  0x91   :  { %v159_v42 = vld [vmem:[%s3072_s0 + $0x478] sm:$0xff]  ;;  %v1013_v52 = vpack.c.bf16 %v833_v37, %v833_v37  ;;  %v1185_v53 = vsel %vm1184_vm5, %v1158_v38, %v1183_v39  ;;  %v129_v54 = vld [vmem:[%s3072_s0 + $0x388] sm:$0xff]  ;;  %v499_v55 = vadd.f32 %v498_v43, %v87_v29  ;;  %v657_v56 = vsel %vm357_vm0, %v183_v30, 0.0 }
  0x92   :  { %v195_v45 = vld [vmem:[%s3072_s0 + $0x598] sm:$0xff]  ;;  %v165_v47 = vld [vmem:[%s3072_s0 + $0x4a8] sm:$0xff]  ;;  %v911_v57 = vadd.f32 %v910_v34, %v909_v28  ;;  %v426_v61 = vadd.f32 %v425_v33, %v424_v31  ;;  %v576_v50 = vadd.f32 %v575_v48, %v123_v41  ;;  %v653_v62 = vadd.f32 %v652_v49, %v159_v42 }
  0x93   :  { %v1737_v51 = vld [vmem:[%s3073_s1 + $0x160] ss:$24 sps:$4 sm:$0xff]   ;;  %v201_v46 = vld [vmem:[%s3072_s0 + $0x5c8] sm:$0xff]  ;;  %v1164_v63 = vunpack.c.l.b16 %v1013_v52  ;;  %v500_v1 = vadd.f32 %v499_v55, %v93_v40  ;;  %v730_v2 = vadd.f32 %v195_v45, %v189_v44  ;;  %v735_v3 = vsel %vm357_vm0, %v225_v36, 0.0  ;;  %s1604_s1 = sshll.u32 %s1764_s19, 4  ;;  %s1605_s1 = int_to_ptr.vmem [resolvable:$true] %s1604_s1 }
  0x94   :  { %v231_v58 = vld [vmem:[%s3072_s0 + $0x6b8] sm:$0xff]  ;;  %v237_v60 = vld [vmem:[%s3072_s0 + $0x6e8] sm:$0xff]  ;;  %v1019_v4 = vpack.c.bf16 %v911_v57, %v911_v57  ;;  %v427_v9 = vrot.slane %v426_v61, 2  ;;  %v577_v10 = vadd.f32 %v576_v50, %v129_v54  ;;  %v654_v11 = vadd.f32 %v653_v62, %v165_v47  ;;  %1572 = vmatpush1.bf16.xpose.msra.mxu0 %v1737_v51  ;;  %s1740_s20 = scalar_lea.vmem %s1605_s1, 128  ;;  %p1745_p1 = scmp.lt.s32.totalorder %s1605_s1, %s1605_s1 }
  0x95   :  { %v135_v0 = vld [vmem:[%s3072_s0 + $0x3b8] sm:$0xff]  ;;  %v1187_v12 = vsel %vm1186_vm6, %v1164_v63, %v1185_v53  ;;  %v177_v5 = vld [vmem:[%s3072_s0 + $0x508] sm:$0xff]  ;;  %v502_v13 = vadd.f32 %v501_v24, %v500_v1  ;;  %v731_v14 = vadd.f32 %v730_v2, %v201_v46  ;;  %v808_v15 = vadd.f32 %v237_v60, %v231_v58  ;;  %p1741_p0 = scmp.ne.s32.totalorder %s1605_s1, %s1740_s20  ;;  %p1746_p2 = scmp.lt.s32.totalorder %s1740_s20, %s1740_s20 }
  0x96   :  { %v171_v59 = vld [vmem:[%s3072_s0 + $0x4d8] sm:$0xff]  ;;  %v1170_v16 = vunpack.c.l.b16 %v1019_v4  ;;  %v213_v17 = vld [vmem:[%s3072_s0 + $0x628] sm:$0xff]  ;;  %v428_v19 = vadd.f32 %v427_v9, %v426_v61  ;;  %v578_v22 = vadd.f32 %v577_v10, %v135_v0 }
  0x97   :  { %v207_v6 = vld [vmem:[%s3072_s0 + $0x5f8] sm:$0xff]  ;;  %v249_v20 = vld [vmem:[%s3072_s0 + $0x748] sm:$0xff]  ;;  %v655_v25 = vadd.f32 %v654_v11, %v171_v59  ;;  %v503_v21 = vrot.slane %v502_v13, 4  ;;  %p1747_p3 = por %p1746_p2, %p1745_p1 }
  0x98   :  { %v243_v7 = vld [vmem:[%s3072_s0 + $0x718] sm:$0xff]  ;;  %v273_v26 = vld [vmem:[%s3072_s0 + $0x808] sm:$0xff]  ;;  %v732_v23 = vadd.f32 %v731_v14, %v207_v6  ;;  %v1189_v28 = vsel %vm1188_vm7, %v1170_v16, %v1187_v12  ;;  %v429_v32 = vrot.slane %v428_v19, 1  ;;  %v580_v37 = vadd.f32 %v2744_v35, %v578_v22  ;;  %v20_v14 = vld [vmem:[%s3072_s0 + $0x20] sm:$0xff] }
  0x99   :  { %v267_v8 = vld [vmem:[%s3072_s0 + $0x7d8] sm:$0x1]  ;;  %v809_v18 = vadd.f32 %v808_v15, %v243_v7  ;;  %v309_v31 = vld [vmem:[%s3072_s0 + $0x928] sm:$0x1]  ;;  %v656_v38 = vadd.f32 %v655_v25, %v177_v5  ;;  %v1225_v39 = vpack.c.b16 %v1189_v28, %v1189_v28  ;;  %v504_v43 = vadd.f32 %v503_v21, %v502_v13  ;;  %v26_v15 = vld [vmem:[%s3072_s0 + $0x50] sm:$0xff]  ;;  %p1748_p4 = pnand %p1747_p3, %p1741_p0 }
  0x9a   :  { %v279_v24 = vld [vmem:[%s3072_s0 + $0x838] sm:$0xff]  ;;  %v813_v27 = vsel %vm357_vm0, %v267_v8, 0.0  ;;  %v285_v40 = vld [vmem:[%s3072_s0 + $0x868] sm:$0xff]  ;;  %v733_v34 = vadd.f32 %v732_v23, %v213_v17  ;;  %v430_v36 = vadd.f32 %v429_v32, %v428_v19  ;;  %v581_v33 = vrot.slane %v580_v37, 4  ;;  %v32_v23 = vld [vmem:[%s3072_s0 + $0x80] sm:$0xff] }
  0x9b   :  { %v219_v29 = vld [vmem:[%s3072_s0 + $0x658] sm:$0xff]  ;;  %v321_v42 = vld [vmem:[%s3072_s0 + $0x988] sm:$0xff]  ;;  %v810_v44 = vadd.f32 %v809_v18, %v249_v20  ;;  %v658_v48 = vadd.f32 %v657_v56, %v656_v38  ;;  %v886_v49 = vadd.f32 %v279_v24, %v273_v26  ;;  %1510 = vmatmul.mubr.bf16.vlgmr.msra.gmra.mrb[0].mxu1 %v1225_v39  ;;  %v505_v53 = vrot.slane %v504_v43, 2  ;;  %v38_v38 = vld [vmem:[%s3072_s0 + $0xb0] sm:$0xff] }
  0x9c   :  { %v255_v30 = vld [vmem:[%s3072_s0 + $0x778] sm:$0xff]  ;;  %v261_v35 = vld [vmem:[%s3072_s0 + $0x7a8] sm:$0xff]  ;;  %v734_v54 = vadd.f32 %v733_v34, %v219_v29  ;;  %v891_v55 = vsel %vm357_vm0, %v309_v31, 0.0  ;;  %v582_v57 = vadd.f32 %v581_v33, %v580_v37  ;;  %v982_v11 = vpack.c.bf16 %v430_v36, %v430_v36  ;;  %v56_v36 = vld [vmem:[%s3072_s0 + $0x140] sm:$0x1] }
  0x9d   :  { %v315_v41 = vld [vmem:[%s3072_s0 + $0x958] sm:$0xff]  ;;  %v811_v47 = vadd.f32 %v810_v44, %v255_v30  ;;  %v659_v46 = vrot.slane %v658_v48, 4  ;;  %v887_v58 = vadd.f32 %v886_v49, %v285_v40  ;;  %v297_v56 = vld [vmem:[%s3072_s0 + $0x8c8] sm:$0xff]  ;;  %v506_v50 = vadd.f32 %v505_v53, %v504_v43 }
  0x9e   :  { %v351_v45 = vld [vmem:[%s3072_s0 + $0xa78] sm:$0x1]  ;;  %v964_v60 = vadd.f32 %v321_v42, %v315_v41  ;;  %v333_v61 = vld [vmem:[%s3072_s0 + $0x9e8] sm:$0xff]  ;;  %v736_v62 = vadd.f32 %v735_v3, %v734_v54  ;;  %v583_v59 = vrot.slane %v582_v57, 2  ;;  %v1133_v22 = vunpack.c.l.b16 %v982_v11 }
  0x9f   :  { %v291_v51 = vld [vmem:[%s3072_s0 + $0x898] sm:$0xff]  ;;  %v812_v63 = vadd.f32 %v811_v47, %v261_v35  ;;  %v969_v0 = vsel %vm357_vm0, %v351_v45, 0.0  ;;  %v660_v1 = vadd.f32 %v659_v46, %v658_v48  ;;  %v507_v8 = vrot.slane %v506_v50, 1  ;;  %v345_v16 = vld [vmem:[%s3072_s0 + $0xa48] sm:$0xff]  ;;  %v44_v45 = vld [vmem:[%s3072_s0 + $0xe0] sm:$0xff] }
  0xa0   :  { %v327_v52 = vld [vmem:[%s3072_s0 + $0x9b8] sm:$0xff]  ;;  %v888_v2 = vadd.f32 %v887_v58, %v291_v51  ;;  %v737_v9 = vrot.slane %v736_v62, 4  ;;  %v584_v3 = vadd.f32 %v583_v59, %v582_v57  ;;  %v405_v29 = vadd.f32 %v26_v15, %v20_v14  ;;  %v62_v57 = vld [vmem:[%s3072_s0 + $0x170] sm:$0xff]  ;;  %v68_v46 = vld [vmem:[%s3072_s0 + $0x1a0] sm:$0xff] }
  0xa1   :  { %v965_v4 = vadd.f32 %v964_v60, %v327_v52  ;;  %v303_v6 = vld [vmem:[%s3072_s0 + $0x8f8] sm:$0xff]  ;;  %v814_v10 = vadd.f32 %v813_v27, %v812_v63  ;;  %v661_v12 = vrot.slane %v660_v1, 2  ;;  %v508_v17 = vadd.f32 %v507_v8, %v506_v50  ;;  %v74_v59 = vld [vmem:[%s3072_s0 + $0x1d0] sm:$0xff]  ;;  %v116_v14 = vld [vmem:[%s3072_s0 + $0x320] sm:$0xff] }
  0xa2   :  { %v339_v7 = vld [vmem:[%s3072_s0 + $0xa18] sm:$0xff]  ;;  %v889_v5 = vadd.f32 %v888_v2, %v297_v56  ;;  %v738_v20 = vadd.f32 %v737_v9, %v736_v62  ;;  %v585_v25 = vrot.slane %v584_v3, 1  ;;  %v406_v42 = vadd.f32 %v405_v29, %v32_v23  ;;  %v146_v15 = vld [vmem:[%s3072_s0 + $0x410] sm:$0xff] }
  0xa3   :  { %v966_v13 = vadd.f32 %v965_v4, %v333_v61  ;;  %v815_v19 = vrot.slane %v814_v10, 4  ;;  %v662_v26 = vadd.f32 %v661_v12, %v660_v1  ;;  %v988_v28 = vpack.c.bf16 %v508_v17, %v508_v17  ;;  %v98_v4 = vld [vmem:[%s3072_s0 + $0x290] sm:$0x1]  ;;  %v80_v12 = vld [vmem:[%s3072_s0 + $0x200] sm:$0xff] }
  0xa4   :  { %v890_v24 = vadd.f32 %v889_v5, %v303_v6  ;;  %v739_v18 = vrot.slane %v738_v20, 2  ;;  %v586_v30 = vadd.f32 %v585_v25, %v584_v3  ;;  %v407_v51 = vadd.f32 %v406_v42, %v38_v38  ;;  %v104_v6 = vld [vmem:[%s3072_s0 + $0x2c0] sm:$0xff]  ;;  %v86_v25 = vld [vmem:[%s3072_s0 + $0x230] sm:$0xff] }
  0xa5   :  { %v967_v21 = vadd.f32 %v966_v13, %v339_v7  ;;  %v816_v27 = vadd.f32 %v815_v19, %v814_v10  ;;  %v663_v31 = vrot.slane %v662_v26, 1  ;;  %v1139_v41 = vunpack.c.l.b16 %v988_v28  ;;  %v110_v7 = vld [vmem:[%s3072_s0 + $0x2f0] sm:$0xff] }
  0xa6   :  { %v892_v32 = vadd.f32 %v891_v55, %v890_v24  ;;  %v740_v39 = vadd.f32 %v739_v18, %v738_v20  ;;  %v994_v35 = vpack.c.bf16 %v586_v30, %v586_v30  ;;  %v50_v55 = vld [vmem:[%s3072_s0 + $0x110] sm:$0xff]  ;;  %v408_v56 = vadd.f32 %v407_v51, %v44_v45 }
  0xa7   :  { %v968_v37 = vadd.f32 %v967_v21, %v345_v16  ;;  %v817_v40 = vrot.slane %v816_v27, 2  ;;  %v664_v43 = vadd.f32 %v663_v31, %v662_v26  ;;  %v1218_v49 = vsel %vm1176_vm1, %v1139_v41, %v1133_v22  ;;  %v152_v16 = vld [vmem:[%s3072_s0 + $0x440] sm:$0xff]  ;;  %v122_v28 = vld [vmem:[%s3072_s0 + $0x350] sm:$0xff] }
  0xa8   :  { %v893_v34 = vrot.slane %v892_v32, 4  ;;  %v741_v33 = vrot.slane %v740_v39, 1  ;;  %v1145_v47 = vunpack.c.l.b16 %v994_v35  ;;  %v410_v61 = vsel %vm357_vm0, %v56_v36, 0.0  ;;  %v140_v26 = vld [vmem:[%s3072_s0 + $0x3e0] sm:$0x1]  ;;  %v158_v29 = vld [vmem:[%s3072_s0 + $0x470] sm:$0xff] }
  0xa9   :  { %v970_v44 = vadd.f32 %v969_v0, %v968_v37  ;;  %v818_v48 = vadd.f32 %v817_v40, %v816_v27  ;;  %v1000_v54 = vpack.c.bf16 %v664_v43, %v664_v43  ;;  %v409_v8 = vadd.f32 %v408_v56, %v50_v55  ;;  %v92_v27 = vld [vmem:[%s3072_s0 + $0x260] sm:$0xff]  ;;  %v182_v38 = vld [vmem:[%s3072_s0 + $0x530] sm:$0x1] }
  0xaa   :  { %v894_v52 = vadd.f32 %v893_v34, %v892_v32  ;;  %v742_v58 = vadd.f32 %v741_v33, %v740_v39  ;;  %v1219_v0 = vsel %vm1178_vm2, %v1145_v47, %v1218_v49  ;;  %v483_v9 = vadd.f32 %v68_v46, %v62_v57  ;;  %v188_v39 = vld [vmem:[%s3072_s0 + $0x560] sm:$0xff]  ;;  %v194_v40 = vld [vmem:[%s3072_s0 + $0x590] sm:$0xff] }
  0xab   :  { %v971_v53 = vrot.slane %v970_v44, 4  ;;  %v819_v60 = vrot.slane %v818_v48, 1  ;;  %v1151_v63 = vunpack.c.l.b16 %v1000_v54  ;;  %v411_v17 = vadd.f32 %v410_v61, %v409_v8  ;;  %v128_v34 = vld [vmem:[%s3072_s0 + $0x380] sm:$0xff]  ;;  %v230_v51 = vld [vmem:[%s3072_s0 + $0x6b0] sm:$0xff] }
  0xac   :  { %v895_v50 = vrot.slane %v894_v52, 2  ;;  %v1006_v2 = vpack.c.bf16 %v742_v58, %v742_v58  ;;  %v484_v20 = vadd.f32 %v483_v9, %v74_v59  ;;  %v488_v24 = vsel %vm357_vm0, %v98_v4, 0.0  ;;  %v200_v49 = vld [vmem:[%s3072_s0 + $0x5c0] sm:$0xff]  ;;  %v134_v47 = vld [vmem:[%s3072_s0 + $0x3b0] sm:$0xff] }
  0xad   :  { %v972_v62 = vadd.f32 %v971_v53, %v970_v44  ;;  %v820_v1 = vadd.f32 %v819_v60, %v818_v48  ;;  %v1220_v3 = vsel %vm1180_vm3, %v1151_v63, %v1219_v0  ;;  %v561_v21 = vadd.f32 %v110_v7, %v104_v6  ;;  %v164_v44 = vld [vmem:[%s3072_s0 + $0x4a0] sm:$0xff]  ;;  %v170_v55 = vld [vmem:[%s3072_s0 + $0x4d0] sm:$0xff] }
  0xae   :  { %v896_v10 = vadd.f32 %v895_v50, %v894_v52  ;;  %v1157_v13 = vunpack.c.l.b16 %v1006_v2  ;;  %v412_v30 = vrot.slane %v411_v17, 4  ;;  %v485_v31 = vadd.f32 %v484_v20, %v80_v12  ;;  %v236_v52 = vld [vmem:[%s3072_s0 + $0x6e0] sm:$0xff]  ;;  %v206_v50 = vld [vmem:[%s3072_s0 + $0x5f0] sm:$0xff] }
  0xaf   :  { %v973_v11 = vrot.slane %v972_v62, 2  ;;  %v1012_v5 = vpack.c.bf16 %v820_v1, %v820_v1  ;;  %v562_v41 = vadd.f32 %v561_v21, %v116_v14  ;;  %v639_v42 = vadd.f32 %v152_v16, %v146_v15  ;;  %v176_v59 = vld [vmem:[%s3072_s0 + $0x500] sm:$0xff]  ;;  %v278_v14 = vld [vmem:[%s3072_s0 + $0x830] sm:$0xff] }
  0xb0   :  { %v897_v19 = vrot.slane %v896_v10, 1  ;;  %v1221_v18 = vsel %vm1182_vm4, %v1157_v13, %v1220_v3  ;;  %v413_v35 = vadd.f32 %v412_v30, %v411_v17  ;;  %v486_v45 = vadd.f32 %v485_v31, %v86_v25  ;;  %v224_v1 = vld [vmem:[%s3072_s0 + $0x680] sm:$0x1]  ;;  %v314_v25 = vld [vmem:[%s3072_s0 + $0x950] sm:$0xff] }
  0xb1   :  { %v974_v22 = vadd.f32 %v973_v11, %v972_v62  ;;  %v1163_v23 = vunpack.c.l.b16 %v1012_v5  ;;  %v566_v36 = vsel %vm357_vm0, %v140_v26, 0.0  ;;  %v563_v53 = vadd.f32 %v562_v41, %v122_v28  ;;  %v242_v62 = vld [vmem:[%s3072_s0 + $0x710] sm:$0xff]  ;;  %v248_v5 = vld [vmem:[%s3072_s0 + $0x740] sm:$0xff] }
  0xb2   :  { %v898_v32 = vadd.f32 %v897_v19, %v896_v10  ;;  %v640_v54 = vadd.f32 %v639_v42, %v158_v29  ;;  %v414_v57 = vrot.slane %v413_v35, 2  ;;  %v487_v46 = vadd.f32 %v486_v45, %v92_v27  ;;  %v212_v10 = vld [vmem:[%s3072_s0 + $0x620] sm:$0xff]  ;;  %v266_v11 = vld [vmem:[%s3072_s0 + $0x7d0] sm:$0x1] }
  0xb3   :  { %v975_v37 = vrot.slane %v974_v22, 1  ;;  %v1222_v43 = vsel %vm1184_vm5, %v1163_v23, %v1221_v18  ;;  %v644_v58 = vsel %vm357_vm0, %v182_v38, 0.0  ;;  %v717_v60 = vadd.f32 %v194_v40, %v188_v39  ;;  %v272_v13 = vld [vmem:[%s3072_s0 + $0x800] sm:$0xff]  ;;  %v254_v27 = vld [vmem:[%s3072_s0 + $0x770] sm:$0xff] }
  0xb4   :  { %v1018_v48 = vpack.c.bf16 %v898_v32, %v898_v32  ;;  %v564_v63 = vadd.f32 %v563_v53, %v128_v34  ;;  %v641_v0 = vadd.f32 %v640_v54, %v164_v44  ;;  %v415_v2 = vadd.f32 %v414_v57, %v413_v35  ;;  %v320_v26 = vld [vmem:[%s3072_s0 + $0x980] sm:$0xff]  ;;  %v338_v57 = vld [vmem:[%s3072_s0 + $0xa10] sm:$0xff] }
  0xb5   :  { %v976_v33 = vadd.f32 %v975_v37, %v974_v22  ;;  %v489_v4 = vadd.f32 %v488_v24, %v487_v46  ;;  %v718_v6 = vadd.f32 %v717_v60, %v200_v49  ;;  %v795_v7 = vadd.f32 %v236_v52, %v230_v51  ;;  %v218_v22 = vld [vmem:[%s3072_s0 + $0x650] sm:$0xff]  ;;  %v284_v28 = vld [vmem:[%s3072_s0 + $0x860] sm:$0xff] }
  0xb6   :  { %v1169_v61 = vunpack.c.l.b16 %v1018_v48  ;;  %v565_v3 = vadd.f32 %v564_v63, %v134_v47  ;;  %v642_v12 = vadd.f32 %v641_v0, %v170_v55  ;;  %v416_v15 = vrot.slane %v415_v2, 1  ;;  %v308_v32 = vld [vmem:[%s3072_s0 + $0x920] sm:$0x1]  ;;  %v326_v37 = vld [vmem:[%s3072_s0 + $0x9b0] sm:$0xff] }
  0xb7   :  { %v1024_v56 = vpack.c.bf16 %v976_v33, %v976_v33  ;;  %v490_v16 = vrot.slane %v489_v4, 4  ;;  %v719_v17 = vadd.f32 %v718_v6, %v206_v50  ;;  %v796_v20 = vadd.f32 %v795_v7, %v242_v62  ;;  %v260_v42 = vld [vmem:[%s3072_s0 + $0x7a0] sm:$0xff]  ;;  %v350_v46 = vld [vmem:[%s3072_s0 + $0xa70] sm:$0x1] }
  0xb8   :  { %v1223_v9 = vsel %vm1186_vm6, %v1169_v61, %v1222_v43  ;;  %v567_v24 = vadd.f32 %v566_v36, %v565_v3  ;;  %v643_v21 = vadd.f32 %v642_v12, %v176_v59  ;;  %v722_v23 = vsel %vm357_vm0, %v224_v1, 0.0  ;;  %v290_v43 = vld [vmem:[%s3072_s0 + $0x890] sm:$0xff]  ;;  %v332_v36 = vld [vmem:[%s3072_s0 + $0x9e0] sm:$0xff] }
  0xb9   :  { %v1175_v8 = vunpack.c.l.b16 %v1024_v56  ;;  %v491_v29 = vadd.f32 %v490_v16, %v489_v4  ;;  %v720_v30 = vadd.f32 %v719_v17, %v212_v10  ;;  %v800_v31 = vsel %vm357_vm0, %v266_v11, 0.0  ;;  %v296_v52 = vld [vmem:[%s3072_s0 + $0x8c0] sm:$0xff]  ;;  %v302_v50 = vld [vmem:[%s3072_s0 + $0x8f0] sm:$0xff] }
  0xba   :  { %v568_v38 = vrot.slane %v567_v24, 4  ;;  %v645_v39 = vadd.f32 %v644_v58, %v643_v21  ;;  %v797_v40 = vadd.f32 %v796_v20, %v248_v5  ;;  %v873_v41 = vadd.f32 %v278_v14, %v272_v13  ;;  %v344_v1 = vld [vmem:[%s3072_s0 + $0xa40] sm:$0xff] }
  0xbb   :  { %v1224_v19 = vsel %vm1188_vm7, %v1175_v8, %v1223_v9  ;;  %v417_v34 = vadd.f32 %v416_v15, %v415_v2  ;;  %v492_v44 = vrot.slane %v491_v29, 2  ;;  %v721_v35 = vadd.f32 %v720_v30, %v218_v22 }
  0xbc   :  { %v1230_v18 = vpack.c.b16 %v1224_v19, %v1224_v19  ;;  %v951_v45 = vadd.f32 %v320_v26, %v314_v25  ;;  %v569_v33 = vadd.f32 %v568_v38, %v567_v24  ;;  %v646_v48 = vrot.slane %v645_v39, 4 }
  0xbd   :  { %v798_v49 = vadd.f32 %v797_v40, %v254_v27  ;;  %v874_v51 = vadd.f32 %v873_v41, %v284_v28  ;;  %v493_v53 = vadd.f32 %v492_v44, %v491_v29  ;;  %v723_v54 = vadd.f32 %v722_v23, %v721_v35 }
  0xbe   :  { %1589 = vmatprep.mubr.bf16.mxu0 %v1230_v18  ;;  %v878_v47 = vsel %vm357_vm0, %v308_v32, 0.0  ;;  %v952_v55 = vadd.f32 %v951_v45, %v326_v37  ;;  %v570_v58 = vrot.slane %v569_v33, 2  ;;  %v647_v60 = vadd.f32 %v646_v48, %v645_v39 }
  0xbf   :  { %v799_v56 = vadd.f32 %v798_v49, %v260_v42  ;;  %v875_v61 = vadd.f32 %v874_v51, %v290_v43  ;;  %v494_v62 = vrot.slane %v493_v53, 1  ;;  %v724_v63 = vrot.slane %v723_v54, 4 }
  0xc0   :  { %v953_v0 = vadd.f32 %v952_v55, %v332_v36  ;;  %v981_v59 = vpack.c.bf16 %v417_v34, %v417_v34  ;;  %v571_v2 = vadd.f32 %v570_v58, %v569_v33  ;;  %v648_v4 = vrot.slane %v647_v60, 2 }
  0xc1   :  { %v801_v6 = vadd.f32 %v800_v31, %v799_v56  ;;  %v876_v7 = vadd.f32 %v875_v61, %v296_v52  ;;  %v495_v8 = vadd.f32 %v494_v62, %v493_v53  ;;  %v725_v9 = vadd.f32 %v724_v63, %v723_v54 }
  0xc2   :  { %v954_v10 = vadd.f32 %v953_v0, %v338_v57  ;;  %v956_v11 = vsel %vm357_vm0, %v350_v46, 0.0  ;;  %v572_v3 = vrot.slane %v571_v2, 1  ;;  %v649_v12 = vadd.f32 %v648_v4, %v647_v60 }
  0xc3   :  { %v802_v5 = vrot.slane %v801_v6, 4  ;;  %v877_v13 = vadd.f32 %v876_v7, %v302_v50  ;;  %v726_v14 = vrot.slane %v725_v9, 2  ;;  %v987_v16 = vpack.c.bf16 %v495_v8, %v495_v8 }
  0xc4   :  { %v955_v15 = vadd.f32 %v954_v10, %v344_v1  ;;  %v1132_v17 = vunpack.c.l.b16 %v981_v59  ;;  %v573_v20 = vadd.f32 %v572_v3, %v571_v2  ;;  %v650_v19 = vrot.slane %v649_v12, 1 }
  0xc5   :  { %v803_v22 = vadd.f32 %v802_v5, %v801_v6  ;;  %v879_v25 = vadd.f32 %v878_v47, %v877_v13  ;;  %v727_v26 = vadd.f32 %v726_v14, %v725_v9  ;;  %v1138_v21 = vunpack.c.l.b16 %v987_v16  ;;  %v1612_v6 = vld [vmem:[%s3074_s2] ss:$0 sm:$0xff] }
  0xc6   :  { %v957_v24 = vadd.f32 %v956_v11, %v955_v15  ;;  %v651_v23 = vadd.f32 %v650_v19, %v649_v12  ;;  %v993_v28 = vpack.c.bf16 %v573_v20, %v573_v20 }
  0xc7   :  { %v804_v18 = vrot.slane %v803_v22, 2  ;;  %v880_v27 = vrot.slane %v879_v25, 4  ;;  %v728_v29 = vrot.slane %v727_v26, 1  ;;  %v1211_v31 = vsel %vm1176_vm1, %v1138_v21, %v1132_v17 }
  0xc8   :  { %v958_v30 = vrot.slane %v957_v24, 4  ;;  %v999_v38 = vpack.c.bf16 %v651_v23, %v651_v23  ;;  %v1144_v39 = vunpack.c.l.b16 %v993_v28 }
  0xc9   :  { %v805_v32 = vadd.f32 %v804_v18, %v803_v22  ;;  %v881_v37 = vadd.f32 %v880_v27, %v879_v25  ;;  %v729_v40 = vadd.f32 %v728_v29, %v727_v26 }
  0xca   :  { %v959_v41 = vadd.f32 %v958_v30, %v957_v24  ;;  %v1150_v34 = vunpack.c.l.b16 %v999_v38  ;;  %v1212_v44 = vsel %vm1178_vm2, %v1144_v39, %v1211_v31 }
  0xcb   :  { %v806_v42 = vrot.slane %v805_v32, 1  ;;  %v882_v43 = vrot.slane %v881_v37, 2  ;;  %v1005_v45 = vpack.c.bf16 %v729_v40, %v729_v40 }
  0xcc   :  { %v960_v35 = vrot.slane %v959_v41, 2  ;;  %v1213_v51 = vsel %vm1180_vm3, %v1150_v34, %v1212_v44 }
  0xcd   :  { %v807_v36 = vadd.f32 %v806_v42, %v805_v32  ;;  %v883_v33 = vadd.f32 %v882_v43, %v881_v37  ;;  %v1156_v49 = vunpack.c.l.b16 %v1005_v45 }
  0xce   :  { %v961_v48 = vadd.f32 %v960_v35, %v959_v41 }
  0xcf   :  { %v884_v52 = vrot.slane %v883_v33, 1  ;;  %v1011_v53 = vpack.c.bf16 %v807_v36, %v807_v36  ;;  %v1214_v57 = vsel %vm1182_vm4, %v1156_v49, %v1213_v51 }
  0xd0   :  { %v962_v54 = vrot.slane %v961_v48, 1 }
  0xd1   :  { %v885_v47 = vadd.f32 %v884_v52, %v883_v33  ;;  %v1162_v55 = vunpack.c.l.b16 %v1011_v53 }
  0xd2   :  { %v963_v46 = vadd.f32 %v962_v54, %v961_v48 }
  0xd3   :  { %v1017_v58 = vpack.c.bf16 %v885_v47, %v885_v47  ;;  %v1215_v56 = vsel %vm1184_vm5, %v1162_v55, %v1214_v57 }
  0xd4   :  { %v1023_v60 = vpack.c.bf16 %v963_v46, %v963_v46 }
  0xd5   :  { %v1168_v61 = vunpack.c.l.b16 %v1017_v58 }
  0xd6   :  { %v1174_v50 = vunpack.c.l.b16 %v1023_v60 }
  0xd7   :  { %v1216_v62 = vsel %vm1186_vm6, %v1168_v61, %v1215_v56 }
  0xd8   :  { %v1217_v63 = vsel %vm1188_vm7, %v1174_v50, %v1216_v62 }
  0xd9   :  { %v1229_v0 = vpack.c.b16 %v1217_v63, %v1217_v63 }
  0xdb   :  { %1590 = vmatmul.mubr.bf16.vlgmr.msra.gmra.mrb[0].mxu0 %v1229_v0 }
 0x16e   :  { %v1511_v59 = vpop.f32.mrb[0].mxu1 }
 0x16f   :  { %v1513_v1 = vpop.f32.mrb[1].mxu1  ;;  %v1512_v7 = vadd.f32 %v1612_v6, %v1511_v59 }
 0x170   :  { %v1514_v2 = vpop.f32.mrb[2].mxu1 }
 0x171   :  { %v1515_v4 = vpop.f32.mrb[3].mxu1 }
 0x1ae   :  { %v1591_v8 = vpop.f32.mrb[0].mxu0 }
 0x1af   :  { %v1662_v9 = vadd.f32 %v1591_v8, %v1512_v7  ;;  %v1593_v10 = vpop.f32.mrb[1].mxu0 }
 0x1b0   :  { %v1594_v11 = vpop.f32.mrb[2].mxu0 }
 0x1b1   :  { %1597 = vst [vmem:[#allocation2] sm:$0xff] %v1662_v9  ;;  %v1595_v3 = vpop.f32.mrb[3].mxu0 }
 0x1b2   :  { %1751 = shalt.err (!%p1748_p4)
}
 0x1b3   :  { %s1752_s2 = scalar_lea.hbm %s3075_s3, 128 }
 0x1b4   :  { %p1753_p5 = scmp.ne.s32.totalorder %s3075_s3, %s1752_s2  ;;  %p1756_p6 = scmp.lt.u32.totalorder %s1752_s2, %s3075_s3 }
 0x1b6   :  { %p1758_p7 = pnand %p1756_p6, %p1753_p5 }
 0x1b8   :  { %1761 = shalt.err (!%p1758_p7)
}
 0x1b9   :  { %1607 = dma.vmem_to_hbm [thread:$0]  %s1605_s1, 128, %s3075_s3, [#allocation3]  }
 0x1ba   :  { %1762 = dma.done.wait [#allocation3], 128  }
 0x1bb   :  { %1763 = vsyncadd [#allocation3], 4294967168 }
 0x1bc   :  { %1611 = vsyncpa [#allocation3], 1 }

</bundles_post_ra>
